<compile_context>
chip_gen: v7x
topology: tpu7x:2x2x1
jax: 0.10.0
libtpu: 0.0.40
codegen_flags: <defaults>
</compile_context>

<pallas_src>
from functools import partial

import jax
import jax.numpy as jnp
from jax.experimental import pallas as pl
from jax.experimental.pallas import tpu as pltpu


def _psi_norm_kernel(m1_ref, m2_ref, out_ref, pad1_ref, pad2_ref, *, H, W):
    """One sample: ||psi(x1, x2)||_F computed from the two channel means.

    m1_ref, m2_ref : (1, H, W) f32   channel means of x1 / x2 for this sample
    out_ref        : (1, 1, 1) f32   per-sample Frobenius norm of psi
    pad1_ref/2     : (H+2, W+2) f32  VMEM scratch holding the zero-padded mean
    """
    # In-kernel pad=1: zero the halo scratch, then write the interior.  The
    # scratch is re-zeroed every grid step (it is uninitialized memory and,
    # with "parallel" grid semantics, each TensorCore owns its own copy).
    pad1_ref[...] = jnp.zeros_like(pad1_ref)
    pad2_ref[...] = jnp.zeros_like(pad2_ref)
    pad1_ref[pl.ds(1, H), pl.ds(1, W)] = m1_ref[0]
    pad2_ref[pl.ds(1, H), pl.ds(1, W)] = m2_ref[0]

    def sobel_mag(pad_ref):
        xp = pad_ref[...]                       # (H+2, W+2)
        # Shared lane-shifted reads (3 instead of 6), separable Sobel.
        a = xp[:, 0:W]
        b = xp[:, 1:W + 1]
        c = xp[:, 2:W + 2]
        s = a + 2.0 * b + c                     # smoothing rows   (H+2, W)
        d = a - c                               # difference rows  (H+2, W)
        # fy = [[1,2,1],[0,0,0],[-1,-2,-1]], fx = fy^T (cross-correlation)
        gy = s[0:H, :] - s[2:H + 2, :]
        gx = d[0:H, :] + 2.0 * d[1:H + 1, :] + d[2:H + 2, :]
        return jnp.sqrt(gx * gx + gy * gy)      # (H, W), >= 0

    xg = sobel_mag(pad1_ref)
    yg = sobel_mag(pad2_ref)

    def frob_sq(v):                             # (H, W) -> (1, 1)
        return jnp.sum(jnp.sum(v * v, axis=1, keepdims=True),
                       axis=0, keepdims=True)

    sxg = frob_sq(xg)
    syg = frob_sq(yg)
    # lamx = sqrt(||yg||_F / ||xg||_F) = (syg / sxg) ** 0.25 ;  lamy = 1/lamx.
    # (Matches the reference exactly, including NaN/Inf if a norm is zero.)
    lamx = jnp.sqrt(jnp.sqrt(syg / sxg))
    lamy = 1.0 / lamx
    # xg, yg are sqrt outputs (>= 0): the reference's .abs() is a no-op.
    p = jnp.tanh(xg * lamx) * jnp.tanh(yg * lamy)
    out_ref[...] = jnp.sqrt(frob_sq(p)).reshape(1, 1, 1)


def _psi_norm(m1, m2):
    """Per-sample ||psi||_F from channel means.  m1, m2: (N, H, W) f32."""
    N, H, W = m1.shape
    kernel = partial(_psi_norm_kernel, H=H, W=W)
    return pl.pallas_call(
        kernel,
        grid=(N,),
        in_specs=[
            pl.BlockSpec((1, H, W), lambda n: (n, 0, 0)),
            pl.BlockSpec((1, H, W), lambda n: (n, 0, 0)),
        ],
        out_specs=pl.BlockSpec((1, 1, 1), lambda n: (n, 0, 0)),
        out_shape=jax.ShapeDtypeStruct((N, 1, 1), jnp.float32),
        scratch_shapes=[
            pltpu.VMEM((H + 2, W + 2), jnp.float32),
            pltpu.VMEM((H + 2, W + 2), jnp.float32),
        ],
        compiler_params=pltpu.CompilerParams(
            dimension_semantics=("parallel",),     # v7x: shard batch over 2 TCs
            vmem_limit_bytes=48 * 1024 * 1024,     # > all defaults, < v7x's 64 MiB
        ),
    )(m1, m2)


def _downsample2x(m):
    # F.interpolate(scale_factor=0.5, mode='bilinear', align_corners=False)
    # is an exact 2x2 average for even spatial sizes.
    N, H, W = m.shape
    return m.reshape(N, H // 2, 2, W // 2, 2).mean(axis=(2, 4))


@partial(jax.jit, static_argnames=("n",))
def exclusion_loss(x1, x2, n=3):
    # Sobel only uses the channel mean, and the mean commutes with the
    # per-channel bilinear downsample -> run the whole pyramid on the means.
    m1 = jnp.mean(x1.astype(jnp.float32), axis=1)      # (N, H, W)
    m2 = jnp.mean(x2.astype(jnp.float32), axis=1)
    loss = jnp.float32(0.0)
    for i in range(n):
        if i > 0:
            m1 = _downsample2x(m1)
            m2 = _downsample2x(m2)
        per_sample = _psi_norm(m1, m2)                  # (N, 1, 1)
        loss = loss + jnp.mean(per_sample)              # == .norm(dim=(2,3)).mean()
    return loss


if __name__ == "__main__":
    key = jax.random.PRNGKey(0)
    k1, k2 = jax.random.split(key)
    # small shapes consistent with the module: batch=2, channels=4, spatial=16
    x1 = jax.random.uniform(k1, (2, 4, 16, 16), dtype=jnp.float32)
    x2 = jax.random.uniform(k2, (2, 4, 16, 16), dtype=jnp.float32)

    loss = exclusion_loss(x1, x2, n=3)
    jax.block_until_ready(loss)
    print("KERNEL_OK")
</pallas_src>

<mosaic_0001>
module attributes {stable_mosaic.version = 11 : i64} {
  func.func @_psi_norm_kernel(%arg0: i32, %arg1: memref<1x16x16xf32, #tpu.memory_space<vmem>>, %arg2: memref<1x16x16xf32, #tpu.memory_space<vmem>>, %arg3: memref<1x1x1xf32, #tpu.memory_space<vmem>>, %arg4: memref<18x18xf32, #tpu.memory_space<vmem>>, %arg5: memref<18x18xf32, #tpu.memory_space<vmem>>) attributes {dimension_semantics = [#tpu.dimension_semantics<parallel>], iteration_bounds = array<i64: 2>, scalar_prefetch = 0 : i64, scratch_operands = 2 : i64, tpu.core_type = #tpu.core_type<tc>, window_params = [{transform_indices = @transform_0, window_bounds = array<i64: 1, 16, 16>}, {transform_indices = @transform_1, window_bounds = array<i64: 1, 16, 16>}, {transform_indices = @transform_2, window_bounds = array<i64: 1, 1, 1>}]} {
    %cst = arith.constant 0.000000e+00 : f32
    %0 = vector.broadcast %cst : f32 to vector<18x18xf32>
    %c0 = arith.constant 0 : index
    %c0_0 = arith.constant 0 : index
    %1 = vector.load %arg4[%c0, %c0_0] : memref<18x18xf32, #tpu.memory_space<vmem>>, vector<18x18xf32>
    tpu.vector_store %arg4[%c0, %c0_0], %0 {strides = array<i32>} : memref<18x18xf32, #tpu.memory_space<vmem>>, vector<18x18xf32>,
    %cst_1 = arith.constant 0.000000e+00 : f32
    %2 = vector.broadcast %cst_1 : f32 to vector<18x18xf32>
    %c0_2 = arith.constant 0 : index
    %c0_3 = arith.constant 0 : index
    %3 = vector.load %arg5[%c0_2, %c0_3] : memref<18x18xf32, #tpu.memory_space<vmem>>, vector<18x18xf32>
    tpu.vector_store %arg5[%c0_2, %c0_3], %2 {strides = array<i32>} : memref<18x18xf32, #tpu.memory_space<vmem>>, vector<18x18xf32>,
    %c0_4 = arith.constant 0 : index
    %c0_5 = arith.constant 0 : index
    %c0_6 = arith.constant 0 : index
    %4 = vector.load %arg1[%c0_4, %c0_5, %c0_6] : memref<1x16x16xf32, #tpu.memory_space<vmem>>, vector<1x16x16xf32>
    %5 = vector.shape_cast %4 : vector<1x16x16xf32> to vector<16x16xf32>
    %c1 = arith.constant 1 : index
    %c1_7 = arith.constant 1 : index
    %6 = vector.load %arg4[%c1, %c1_7] : memref<18x18xf32, #tpu.memory_space<vmem>>, vector<16x16xf32>
    tpu.vector_store %arg4[%c1, %c1_7], %5 {strides = array<i32>} : memref<18x18xf32, #tpu.memory_space<vmem>>, vector<16x16xf32>,
    %c0_8 = arith.constant 0 : index
    %c0_9 = arith.constant 0 : index
    %c0_10 = arith.constant 0 : index
    %7 = vector.load %arg2[%c0_8, %c0_9, %c0_10] : memref<1x16x16xf32, #tpu.memory_space<vmem>>, vector<1x16x16xf32>
    %8 = vector.shape_cast %7 : vector<1x16x16xf32> to vector<16x16xf32>
    %c1_11 = arith.constant 1 : index
    %c1_12 = arith.constant 1 : index
    %9 = vector.load %arg5[%c1_11, %c1_12] : memref<18x18xf32, #tpu.memory_space<vmem>>, vector<16x16xf32>
    tpu.vector_store %arg5[%c1_11, %c1_12], %8 {strides = array<i32>} : memref<18x18xf32, #tpu.memory_space<vmem>>, vector<16x16xf32>,
    %c0_13 = arith.constant 0 : index
    %c0_14 = arith.constant 0 : index
    %10 = vector.load %arg4[%c0_13, %c0_14] : memref<18x18xf32, #tpu.memory_space<vmem>>, vector<18x18xf32>
    %11 = vector.extract_strided_slice %10 {offsets = [0, 0], sizes = [18, 16], strides = [1, 1]} : vector<18x18xf32> to vector<18x16xf32>
    %12 = vector.extract_strided_slice %10 {offsets = [0, 1], sizes = [18, 16], strides = [1, 1]} : vector<18x18xf32> to vector<18x16xf32>
    %13 = vector.extract_strided_slice %10 {offsets = [0, 2], sizes = [18, 16], strides = [1, 1]} : vector<18x18xf32> to vector<18x16xf32>
    %cst_15 = arith.constant 2.000000e+00 : f32
    %14 = vector.broadcast %cst_15 : f32 to vector<18x16xf32>
    %15 = arith.mulf %14, %12 : vector<18x16xf32>
    %16 = arith.addf %11, %15 : vector<18x16xf32>
    %17 = arith.addf %16, %13 : vector<18x16xf32>
    %18 = arith.subf %11, %13 : vector<18x16xf32>
    %19 = vector.extract_strided_slice %17 {offsets = [0, 0], sizes = [16, 16], strides = [1, 1]} : vector<18x16xf32> to vector<16x16xf32>
    %20 = vector.extract_strided_slice %17 {offsets = [2, 0], sizes = [16, 16], strides = [1, 1]} : vector<18x16xf32> to vector<16x16xf32>
    %21 = arith.subf %19, %20 : vector<16x16xf32>
    %22 = vector.extract_strided_slice %18 {offsets = [0, 0], sizes = [16, 16], strides = [1, 1]} : vector<18x16xf32> to vector<16x16xf32>
    %23 = vector.extract_strided_slice %18 {offsets = [1, 0], sizes = [16, 16], strides = [1, 1]} : vector<18x16xf32> to vector<16x16xf32>
    %cst_16 = arith.constant 2.000000e+00 : f32
    %24 = vector.broadcast %cst_16 : f32 to vector<16x16xf32>
    %25 = arith.mulf %24, %23 : vector<16x16xf32>
    %26 = arith.addf %22, %25 : vector<16x16xf32>
    %27 = vector.extract_strided_slice %18 {offsets = [2, 0], sizes = [16, 16], strides = [1, 1]} : vector<18x16xf32> to vector<16x16xf32>
    %28 = arith.addf %26, %27 : vector<16x16xf32>
    %29 = arith.mulf %28, %28 : vector<16x16xf32>
    %30 = arith.mulf %21, %21 : vector<16x16xf32>
    %31 = arith.addf %29, %30 : vector<16x16xf32>
    %32 = math.sqrt %31 : vector<16x16xf32>
    %c0_17 = arith.constant 0 : index
    %c0_18 = arith.constant 0 : index
    %33 = vector.load %arg5[%c0_17, %c0_18] : memref<18x18xf32, #tpu.memory_space<vmem>>, vector<18x18xf32>
    %34 = vector.extract_strided_slice %33 {offsets = [0, 0], sizes = [18, 16], strides = [1, 1]} : vector<18x18xf32> to vector<18x16xf32>
    %35 = vector.extract_strided_slice %33 {offsets = [0, 1], sizes = [18, 16], strides = [1, 1]} : vector<18x18xf32> to vector<18x16xf32>
    %36 = vector.extract_strided_slice %33 {offsets = [0, 2], sizes = [18, 16], strides = [1, 1]} : vector<18x18xf32> to vector<18x16xf32>
    %cst_19 = arith.constant 2.000000e+00 : f32
    %37 = vector.broadcast %cst_19 : f32 to vector<18x16xf32>
    %38 = arith.mulf %37, %35 : vector<18x16xf32>
    %39 = arith.addf %34, %38 : vector<18x16xf32>
    %40 = arith.addf %39, %36 : vector<18x16xf32>
    %41 = arith.subf %34, %36 : vector<18x16xf32>
    %42 = vector.extract_strided_slice %40 {offsets = [0, 0], sizes = [16, 16], strides = [1, 1]} : vector<18x16xf32> to vector<16x16xf32>
    %43 = vector.extract_strided_slice %40 {offsets = [2, 0], sizes = [16, 16], strides = [1, 1]} : vector<18x16xf32> to vector<16x16xf32>
    %44 = arith.subf %42, %43 : vector<16x16xf32>
    %45 = vector.extract_strided_slice %41 {offsets = [0, 0], sizes = [16, 16], strides = [1, 1]} : vector<18x16xf32> to vector<16x16xf32>
    %46 = vector.extract_strided_slice %41 {offsets = [1, 0], sizes = [16, 16], strides = [1, 1]} : vector<18x16xf32> to vector<16x16xf32>
    %cst_20 = arith.constant 2.000000e+00 : f32
    %47 = vector.broadcast %cst_20 : f32 to vector<16x16xf32>
    %48 = arith.mulf %47, %46 : vector<16x16xf32>
    %49 = arith.addf %45, %48 : vector<16x16xf32>
    %50 = vector.extract_strided_slice %41 {offsets = [2, 0], sizes = [16, 16], strides = [1, 1]} : vector<18x16xf32> to vector<16x16xf32>
    %51 = arith.addf %49, %50 : vector<16x16xf32>
    %52 = arith.mulf %51, %51 : vector<16x16xf32>
    %53 = arith.mulf %44, %44 : vector<16x16xf32>
    %54 = arith.addf %52, %53 : vector<16x16xf32>
    %55 = math.sqrt %54 : vector<16x16xf32>
    %56 = arith.mulf %32, %32 : vector<16x16xf32>
    %cst_21 = arith.constant dense<0.000000e+00> : vector<16xf32>
    %57 = vector.multi_reduction <add>, %56, %cst_21 [1] : vector<16x16xf32> to vector<16xf32>
    %58 = vector.shape_cast %57 : vector<16xf32> to vector<16x1xf32>
    %cst_22 = arith.constant dense<0.000000e+00> : vector<1xf32>
    %59 = vector.multi_reduction <add>, %58, %cst_22 [0] : vector<16x1xf32> to vector<1xf32>
    %60 = vector.shape_cast %59 : vector<1xf32> to vector<1x1xf32>
    %61 = arith.mulf %55, %55 : vector<16x16xf32>
    %cst_23 = arith.constant dense<0.000000e+00> : vector<16xf32>
    %62 = vector.multi_reduction <add>, %61, %cst_23 [1] : vector<16x16xf32> to vector<16xf32>
    %63 = vector.shape_cast %62 : vector<16xf32> to vector<16x1xf32>
    %cst_24 = arith.constant dense<0.000000e+00> : vector<1xf32>
    %64 = vector.multi_reduction <add>, %63, %cst_24 [0] : vector<16x1xf32> to vector<1xf32>
    %65 = vector.shape_cast %64 : vector<1xf32> to vector<1x1xf32>
    %66 = arith.divf %65, %60 : vector<1x1xf32>
    %67 = math.sqrt %66 : vector<1x1xf32>
    %68 = math.sqrt %67 : vector<1x1xf32>
    %cst_25 = arith.constant 1.000000e+00 : f32
    %69 = vector.broadcast %cst_25 : f32 to vector<1x1xf32>
    %70 = arith.divf %69, %68 : vector<1x1xf32>
    %71 = vector.broadcast %68 : vector<1x1xf32> to vector<16x16xf32>
    %72 = arith.mulf %32, %71 : vector<16x16xf32>
    %73 = math.tanh %72 : vector<16x16xf32>
    %74 = vector.broadcast %70 : vector<1x1xf32> to vector<16x16xf32>
    %75 = arith.mulf %55, %74 : vector<16x16xf32>
    %76 = math.tanh %75 : vector<16x16xf32>
    %77 = arith.mulf %73, %76 : vector<16x16xf32>
    %78 = arith.mulf %77, %77 : vector<16x16xf32>
    %cst_26 = arith.constant dense<0.000000e+00> : vector<16xf32>
    %79 = vector.multi_reduction <add>, %78, %cst_26 [1] : vector<16x16xf32> to vector<16xf32>
    %80 = vector.shape_cast %79 : vector<16xf32> to vector<16x1xf32>
    %cst_27 = arith.constant dense<0.000000e+00> : vector<1xf32>
    %81 = vector.multi_reduction <add>, %80, %cst_27 [0] : vector<16x1xf32> to vector<1xf32>
    %82 = vector.shape_cast %81 : vector<1xf32> to vector<1x1xf32>
    %83 = math.sqrt %82 : vector<1x1xf32>
    %84 = vector.shape_cast %83 : vector<1x1xf32> to vector<1x1x1xf32>
    %c0_28 = arith.constant 0 : index
    %c0_29 = arith.constant 0 : index
    %c0_30 = arith.constant 0 : index
    %85 = vector.load %arg3[%c0_28, %c0_29, %c0_30] : memref<1x1x1xf32, #tpu.memory_space<vmem>>, vector<1x1x1xf32>
    tpu.vector_store %arg3[%c0_28, %c0_29, %c0_30], %84 {strides = array<i32>} : memref<1x1x1xf32, #tpu.memory_space<vmem>>, vector<1x1x1xf32>,
    return
  }
  func.func @transform_0(%arg0: i32) -> (i32, i32, i32) {
    %c0_i32 = arith.constant 0 : i32
    %c0_i32_0 = arith.constant 0 : i32
    %c0_i32_1 = arith.constant 0 : i32
    return %arg0, %c0_i32, %c0_i32_0 : i32, i32, i32
  }
  func.func @transform_1(%arg0: i32) -> (i32, i32, i32) {
    %c0_i32 = arith.constant 0 : i32
    %c0_i32_0 = arith.constant 0 : i32
    %c0_i32_1 = arith.constant 0 : i32
    return %arg0, %c0_i32, %c0_i32_0 : i32, i32, i32
  }
  func.func @transform_2(%arg0: i32) -> (i32, i32, i32) {
    %c0_i32 = arith.constant 0 : i32
    %c0_i32_0 = arith.constant 0 : i32
    %c0_i32_1 = arith.constant 0 : i32
    return %arg0, %c0_i32, %c0_i32_0 : i32, i32, i32
  }
}

module attributes {stable_mosaic.version = 11 : i64} {
  func.func @_psi_norm_kernel(%arg0: i32, %arg1: memref<1x4x4xf32, #tpu.memory_space<vmem>>, %arg2: memref<1x4x4xf32, #tpu.memory_space<vmem>>, %arg3: memref<1x1x1xf32, #tpu.memory_space<vmem>>, %arg4: memref<6x6xf32, #tpu.memory_space<vmem>>, %arg5: memref<6x6xf32, #tpu.memory_space<vmem>>) attributes {dimension_semantics = [#tpu.dimension_semantics<parallel>], iteration_bounds = array<i64: 2>, scalar_prefetch = 0 : i64, scratch_operands = 2 : i64, tpu.core_type = #tpu.core_type<tc>, window_params = [{transform_indices = @transform_0, window_bounds = array<i64: 1, 4, 4>}, {transform_indices = @transform_1, window_bounds = array<i64: 1, 4, 4>}, {transform_indices = @transform_2, window_bounds = array<i64: 1, 1, 1>}]} {
    %cst = arith.constant 0.000000e+00 : f32
    %0 = vector.broadcast %cst : f32 to vector<6x6xf32>
    %c0 = arith.constant 0 : index
    %c0_0 = arith.constant 0 : index
    %1 = vector.load %arg4[%c0, %c0_0] : memref<6x6xf32, #tpu.memory_space<vmem>>, vector<6x6xf32>
    tpu.vector_store %arg4[%c0, %c0_0], %0 {strides = array<i32>} : memref<6x6xf32, #tpu.memory_space<vmem>>, vector<6x6xf32>,
    %cst_1 = arith.constant 0.000000e+00 : f32
    %2 = vector.broadcast %cst_1 : f32 to vector<6x6xf32>
    %c0_2 = arith.constant 0 : index
    %c0_3 = arith.constant 0 : index
    %3 = vector.load %arg5[%c0_2, %c0_3] : memref<6x6xf32, #tpu.memory_space<vmem>>, vector<6x6xf32>
    tpu.vector_store %arg5[%c0_2, %c0_3], %2 {strides = array<i32>} : memref<6x6xf32, #tpu.memory_space<vmem>>, vector<6x6xf32>,
    %c0_4 = arith.constant 0 : index
    %c0_5 = arith.constant 0 : index
    %c0_6 = arith.constant 0 : index
    %4 = vector.load %arg1[%c0_4, %c0_5, %c0_6] : memref<1x4x4xf32, #tpu.memory_space<vmem>>, vector<1x4x4xf32>
    %5 = vector.shape_cast %4 : vector<1x4x4xf32> to vector<4x4xf32>
    %c1 = arith.constant 1 : index
    %c1_7 = arith.constant 1 : index
    %6 = vector.load %arg4[%c1, %c1_7] : memref<6x6xf32, #tpu.memory_space<vmem>>, vector<4x4xf32>
    tpu.vector_store %arg4[%c1, %c1_7], %5 {strides = array<i32>} : memref<6x6xf32, #tpu.memory_space<vmem>>, vector<4x4xf32>,
    %c0_8 = arith.constant 0 : index
    %c0_9 = arith.constant 0 : index
    %c0_10 = arith.constant 0 : index
    %7 = vector.load %arg2[%c0_8, %c0_9, %c0_10] : memref<1x4x4xf32, #tpu.memory_space<vmem>>, vector<1x4x4xf32>
    %8 = vector.shape_cast %7 : vector<1x4x4xf32> to vector<4x4xf32>
    %c1_11 = arith.constant 1 : index
    %c1_12 = arith.constant 1 : index
    %9 = vector.load %arg5[%c1_11, %c1_12] : memref<6x6xf32, #tpu.memory_space<vmem>>, vector<4x4xf32>
    tpu.vector_store %arg5[%c1_11, %c1_12], %8 {strides = array<i32>} : memref<6x6xf32, #tpu.memory_space<vmem>>, vector<4x4xf32>,
    %c0_13 = arith.constant 0 : index
    %c0_14 = arith.constant 0 : index
    %10 = vector.load %arg4[%c0_13, %c0_14] : memref<6x6xf32, #tpu.memory_space<vmem>>, vector<6x6xf32>
    %11 = vector.extract_strided_slice %10 {offsets = [0, 0], sizes = [6, 4], strides = [1, 1]} : vector<6x6xf32> to vector<6x4xf32>
    %12 = vector.extract_strided_slice %10 {offsets = [0, 1], sizes = [6, 4], strides = [1, 1]} : vector<6x6xf32> to vector<6x4xf32>
    %13 = vector.extract_strided_slice %10 {offsets = [0, 2], sizes = [6, 4], strides = [1, 1]} : vector<6x6xf32> to vector<6x4xf32>
    %cst_15 = arith.constant 2.000000e+00 : f32
    %14 = vector.broadcast %cst_15 : f32 to vector<6x4xf32>
    %15 = arith.mulf %14, %12 : vector<6x4xf32>
    %16 = arith.addf %11, %15 : vector<6x4xf32>
    %17 = arith.addf %16, %13 : vector<6x4xf32>
    %18 = arith.subf %11, %13 : vector<6x4xf32>
    %19 = vector.extract_strided_slice %17 {offsets = [0, 0], sizes = [4, 4], strides = [1, 1]} : vector<6x4xf32> to vector<4x4xf32>
    %20 = vector.extract_strided_slice %17 {offsets = [2, 0], sizes = [4, 4], strides = [1, 1]} : vector<6x4xf32> to vector<4x4xf32>
    %21 = arith.subf %19, %20 : vector<4x4xf32>
    %22 = vector.extract_strided_slice %18 {offsets = [0, 0], sizes = [4, 4], strides = [1, 1]} : vector<6x4xf32> to vector<4x4xf32>
    %23 = vector.extract_strided_slice %18 {offsets = [1, 0], sizes = [4, 4], strides = [1, 1]} : vector<6x4xf32> to vector<4x4xf32>
    %cst_16 = arith.constant 2.000000e+00 : f32
    %24 = vector.broadcast %cst_16 : f32 to vector<4x4xf32>
    %25 = arith.mulf %24, %23 : vector<4x4xf32>
    %26 = arith.addf %22, %25 : vector<4x4xf32>
    %27 = vector.extract_strided_slice %18 {offsets = [2, 0], sizes = [4, 4], strides = [1, 1]} : vector<6x4xf32> to vector<4x4xf32>
    %28 = arith.addf %26, %27 : vector<4x4xf32>
    %29 = arith.mulf %28, %28 : vector<4x4xf32>
    %30 = arith.mulf %21, %21 : vector<4x4xf32>
    %31 = arith.addf %29, %30 : vector<4x4xf32>
    %32 = math.sqrt %31 : vector<4x4xf32>
    %c0_17 = arith.constant 0 : index
    %c0_18 = arith.constant 0 : index
    %33 = vector.load %arg5[%c0_17, %c0_18] : memref<6x6xf32, #tpu.memory_space<vmem>>, vector<6x6xf32>
    %34 = vector.extract_strided_slice %33 {offsets = [0, 0], sizes = [6, 4], strides = [1, 1]} : vector<6x6xf32> to vector<6x4xf32>
    %35 = vector.extract_strided_slice %33 {offsets = [0, 1], sizes = [6, 4], strides = [1, 1]} : vector<6x6xf32> to vector<6x4xf32>
    %36 = vector.extract_strided_slice %33 {offsets = [0, 2], sizes = [6, 4], strides = [1, 1]} : vector<6x6xf32> to vector<6x4xf32>
    %cst_19 = arith.constant 2.000000e+00 : f32
    %37 = vector.broadcast %cst_19 : f32 to vector<6x4xf32>
    %38 = arith.mulf %37, %35 : vector<6x4xf32>
    %39 = arith.addf %34, %38 : vector<6x4xf32>
    %40 = arith.addf %39, %36 : vector<6x4xf32>
    %41 = arith.subf %34, %36 : vector<6x4xf32>
    %42 = vector.extract_strided_slice %40 {offsets = [0, 0], sizes = [4, 4], strides = [1, 1]} : vector<6x4xf32> to vector<4x4xf32>
    %43 = vector.extract_strided_slice %40 {offsets = [2, 0], sizes = [4, 4], strides = [1, 1]} : vector<6x4xf32> to vector<4x4xf32>
    %44 = arith.subf %42, %43 : vector<4x4xf32>
    %45 = vector.extract_strided_slice %41 {offsets = [0, 0], sizes = [4, 4], strides = [1, 1]} : vector<6x4xf32> to vector<4x4xf32>
    %46 = vector.extract_strided_slice %41 {offsets = [1, 0], sizes = [4, 4], strides = [1, 1]} : vector<6x4xf32> to vector<4x4xf32>
    %cst_20 = arith.constant 2.000000e+00 : f32
    %47 = vector.broadcast %cst_20 : f32 to vector<4x4xf32>
    %48 = arith.mulf %47, %46 : vector<4x4xf32>
    %49 = arith.addf %45, %48 : vector<4x4xf32>
    %50 = vector.extract_strided_slice %41 {offsets = [2, 0], sizes = [4, 4], strides = [1, 1]} : vector<6x4xf32> to vector<4x4xf32>
    %51 = arith.addf %49, %50 : vector<4x4xf32>
    %52 = arith.mulf %51, %51 : vector<4x4xf32>
    %53 = arith.mulf %44, %44 : vector<4x4xf32>
    %54 = arith.addf %52, %53 : vector<4x4xf32>
    %55 = math.sqrt %54 : vector<4x4xf32>
    %56 = arith.mulf %32, %32 : vector<4x4xf32>
    %cst_21 = arith.constant dense<0.000000e+00> : vector<4xf32>
    %57 = vector.multi_reduction <add>, %56, %cst_21 [1] : vector<4x4xf32> to vector<4xf32>
    %58 = vector.shape_cast %57 : vector<4xf32> to vector<4x1xf32>
    %cst_22 = arith.constant dense<0.000000e+00> : vector<1xf32>
    %59 = vector.multi_reduction <add>, %58, %cst_22 [0] : vector<4x1xf32> to vector<1xf32>
    %60 = vector.shape_cast %59 : vector<1xf32> to vector<1x1xf32>
    %61 = arith.mulf %55, %55 : vector<4x4xf32>
    %cst_23 = arith.constant dense<0.000000e+00> : vector<4xf32>
    %62 = vector.multi_reduction <add>, %61, %cst_23 [1] : vector<4x4xf32> to vector<4xf32>
    %63 = vector.shape_cast %62 : vector<4xf32> to vector<4x1xf32>
    %cst_24 = arith.constant dense<0.000000e+00> : vector<1xf32>
    %64 = vector.multi_reduction <add>, %63, %cst_24 [0] : vector<4x1xf32> to vector<1xf32>
    %65 = vector.shape_cast %64 : vector<1xf32> to vector<1x1xf32>
    %66 = arith.divf %65, %60 : vector<1x1xf32>
    %67 = math.sqrt %66 : vector<1x1xf32>
    %68 = math.sqrt %67 : vector<1x1xf32>
    %cst_25 = arith.constant 1.000000e+00 : f32
    %69 = vector.broadcast %cst_25 : f32 to vector<1x1xf32>
    %70 = arith.divf %69, %68 : vector<1x1xf32>
    %71 = vector.broadcast %68 : vector<1x1xf32> to vector<4x4xf32>
    %72 = arith.mulf %32, %71 : vector<4x4xf32>
    %73 = math.tanh %72 : vector<4x4xf32>
    %74 = vector.broadcast %70 : vector<1x1xf32> to vector<4x4xf32>
    %75 = arith.mulf %55, %74 : vector<4x4xf32>
    %76 = math.tanh %75 : vector<4x4xf32>
    %77 = arith.mulf %73, %76 : vector<4x4xf32>
    %78 = arith.mulf %77, %77 : vector<4x4xf32>
    %cst_26 = arith.constant dense<0.000000e+00> : vector<4xf32>
    %79 = vector.multi_reduction <add>, %78, %cst_26 [1] : vector<4x4xf32> to vector<4xf32>
    %80 = vector.shape_cast %79 : vector<4xf32> to vector<4x1xf32>
    %cst_27 = arith.constant dense<0.000000e+00> : vector<1xf32>
    %81 = vector.multi_reduction <add>, %80, %cst_27 [0] : vector<4x1xf32> to vector<1xf32>
    %82 = vector.shape_cast %81 : vector<1xf32> to vector<1x1xf32>
    %83 = math.sqrt %82 : vector<1x1xf32>
    %84 = vector.shape_cast %83 : vector<1x1xf32> to vector<1x1x1xf32>
    %c0_28 = arith.constant 0 : index
    %c0_29 = arith.constant 0 : index
    %c0_30 = arith.constant 0 : index
    %85 = vector.load %arg3[%c0_28, %c0_29, %c0_30] : memref<1x1x1xf32, #tpu.memory_space<vmem>>, vector<1x1x1xf32>
    tpu.vector_store %arg3[%c0_28, %c0_29, %c0_30], %84 {strides = array<i32>} : memref<1x1x1xf32, #tpu.memory_space<vmem>>, vector<1x1x1xf32>,
    return
  }
  func.func @transform_0(%arg0: i32) -> (i32, i32, i32) {
    %c0_i32 = arith.constant 0 : i32
    %c0_i32_0 = arith.constant 0 : i32
    %c0_i32_1 = arith.constant 0 : i32
    return %arg0, %c0_i32, %c0_i32_0 : i32, i32, i32
  }
  func.func @transform_1(%arg0: i32) -> (i32, i32, i32) {
    %c0_i32 = arith.constant 0 : i32
    %c0_i32_0 = arith.constant 0 : i32
    %c0_i32_1 = arith.constant 0 : i32
    return %arg0, %c0_i32, %c0_i32_0 : i32, i32, i32
  }
  func.func @transform_2(%arg0: i32) -> (i32, i32, i32) {
    %c0_i32 = arith.constant 0 : i32
    %c0_i32_0 = arith.constant 0 : i32
    %c0_i32_1 = arith.constant 0 : i32
    return %arg0, %c0_i32, %c0_i32_0 : i32, i32, i32
  }
}

module attributes {stable_mosaic.version = 11 : i64} {
  func.func @_psi_norm_kernel(%arg0: i32, %arg1: memref<1x8x8xf32, #tpu.memory_space<vmem>>, %arg2: memref<1x8x8xf32, #tpu.memory_space<vmem>>, %arg3: memref<1x1x1xf32, #tpu.memory_space<vmem>>, %arg4: memref<10x10xf32, #tpu.memory_space<vmem>>, %arg5: memref<10x10xf32, #tpu.memory_space<vmem>>) attributes {dimension_semantics = [#tpu.dimension_semantics<parallel>], iteration_bounds = array<i64: 2>, scalar_prefetch = 0 : i64, scratch_operands = 2 : i64, tpu.core_type = #tpu.core_type<tc>, window_params = [{transform_indices = @transform_0, window_bounds = array<i64: 1, 8, 8>}, {transform_indices = @transform_1, window_bounds = array<i64: 1, 8, 8>}, {transform_indices = @transform_2, window_bounds = array<i64: 1, 1, 1>}]} {
    %cst = arith.constant 0.000000e+00 : f32
    %0 = vector.broadcast %cst : f32 to vector<10x10xf32>
    %c0 = arith.constant 0 : index
    %c0_0 = arith.constant 0 : index
    %1 = vector.load %arg4[%c0, %c0_0] : memref<10x10xf32, #tpu.memory_space<vmem>>, vector<10x10xf32>
    tpu.vector_store %arg4[%c0, %c0_0], %0 {strides = array<i32>} : memref<10x10xf32, #tpu.memory_space<vmem>>, vector<10x10xf32>,
    %cst_1 = arith.constant 0.000000e+00 : f32
    %2 = vector.broadcast %cst_1 : f32 to vector<10x10xf32>
    %c0_2 = arith.constant 0 : index
    %c0_3 = arith.constant 0 : index
    %3 = vector.load %arg5[%c0_2, %c0_3] : memref<10x10xf32, #tpu.memory_space<vmem>>, vector<10x10xf32>
    tpu.vector_store %arg5[%c0_2, %c0_3], %2 {strides = array<i32>} : memref<10x10xf32, #tpu.memory_space<vmem>>, vector<10x10xf32>,
    %c0_4 = arith.constant 0 : index
    %c0_5 = arith.constant 0 : index
    %c0_6 = arith.constant 0 : index
    %4 = vector.load %arg1[%c0_4, %c0_5, %c0_6] : memref<1x8x8xf32, #tpu.memory_space<vmem>>, vector<1x8x8xf32>
    %5 = vector.shape_cast %4 : vector<1x8x8xf32> to vector<8x8xf32>
    %c1 = arith.constant 1 : index
    %c1_7 = arith.constant 1 : index
    %6 = vector.load %arg4[%c1, %c1_7] : memref<10x10xf32, #tpu.memory_space<vmem>>, vector<8x8xf32>
    tpu.vector_store %arg4[%c1, %c1_7], %5 {strides = array<i32>} : memref<10x10xf32, #tpu.memory_space<vmem>>, vector<8x8xf32>,
    %c0_8 = arith.constant 0 : index
    %c0_9 = arith.constant 0 : index
    %c0_10 = arith.constant 0 : index
    %7 = vector.load %arg2[%c0_8, %c0_9, %c0_10] : memref<1x8x8xf32, #tpu.memory_space<vmem>>, vector<1x8x8xf32>
    %8 = vector.shape_cast %7 : vector<1x8x8xf32> to vector<8x8xf32>
    %c1_11 = arith.constant 1 : index
    %c1_12 = arith.constant 1 : index
    %9 = vector.load %arg5[%c1_11, %c1_12] : memref<10x10xf32, #tpu.memory_space<vmem>>, vector<8x8xf32>
    tpu.vector_store %arg5[%c1_11, %c1_12], %8 {strides = array<i32>} : memref<10x10xf32, #tpu.memory_space<vmem>>, vector<8x8xf32>,
    %c0_13 = arith.constant 0 : index
    %c0_14 = arith.constant 0 : index
    %10 = vector.load %arg4[%c0_13, %c0_14] : memref<10x10xf32, #tpu.memory_space<vmem>>, vector<10x10xf32>
    %11 = vector.extract_strided_slice %10 {offsets = [0, 0], sizes = [10, 8], strides = [1, 1]} : vector<10x10xf32> to vector<10x8xf32>
    %12 = vector.extract_strided_slice %10 {offsets = [0, 1], sizes = [10, 8], strides = [1, 1]} : vector<10x10xf32> to vector<10x8xf32>
    %13 = vector.extract_strided_slice %10 {offsets = [0, 2], sizes = [10, 8], strides = [1, 1]} : vector<10x10xf32> to vector<10x8xf32>
    %cst_15 = arith.constant 2.000000e+00 : f32
    %14 = vector.broadcast %cst_15 : f32 to vector<10x8xf32>
    %15 = arith.mulf %14, %12 : vector<10x8xf32>
    %16 = arith.addf %11, %15 : vector<10x8xf32>
    %17 = arith.addf %16, %13 : vector<10x8xf32>
    %18 = arith.subf %11, %13 : vector<10x8xf32>
    %19 = vector.extract_strided_slice %17 {offsets = [0, 0], sizes = [8, 8], strides = [1, 1]} : vector<10x8xf32> to vector<8x8xf32>
    %20 = vector.extract_strided_slice %17 {offsets = [2, 0], sizes = [8, 8], strides = [1, 1]} : vector<10x8xf32> to vector<8x8xf32>
    %21 = arith.subf %19, %20 : vector<8x8xf32>
    %22 = vector.extract_strided_slice %18 {offsets = [0, 0], sizes = [8, 8], strides = [1, 1]} : vector<10x8xf32> to vector<8x8xf32>
    %23 = vector.extract_strided_slice %18 {offsets = [1, 0], sizes = [8, 8], strides = [1, 1]} : vector<10x8xf32> to vector<8x8xf32>
    %cst_16 = arith.constant 2.000000e+00 : f32
    %24 = vector.broadcast %cst_16 : f32 to vector<8x8xf32>
    %25 = arith.mulf %24, %23 : vector<8x8xf32>
    %26 = arith.addf %22, %25 : vector<8x8xf32>
    %27 = vector.extract_strided_slice %18 {offsets = [2, 0], sizes = [8, 8], strides = [1, 1]} : vector<10x8xf32> to vector<8x8xf32>
    %28 = arith.addf %26, %27 : vector<8x8xf32>
    %29 = arith.mulf %28, %28 : vector<8x8xf32>
    %30 = arith.mulf %21, %21 : vector<8x8xf32>
    %31 = arith.addf %29, %30 : vector<8x8xf32>
    %32 = math.sqrt %31 : vector<8x8xf32>
    %c0_17 = arith.constant 0 : index
    %c0_18 = arith.constant 0 : index
    %33 = vector.load %arg5[%c0_17, %c0_18] : memref<10x10xf32, #tpu.memory_space<vmem>>, vector<10x10xf32>
    %34 = vector.extract_strided_slice %33 {offsets = [0, 0], sizes = [10, 8], strides = [1, 1]} : vector<10x10xf32> to vector<10x8xf32>
    %35 = vector.extract_strided_slice %33 {offsets = [0, 1], sizes = [10, 8], strides = [1, 1]} : vector<10x10xf32> to vector<10x8xf32>
    %36 = vector.extract_strided_slice %33 {offsets = [0, 2], sizes = [10, 8], strides = [1, 1]} : vector<10x10xf32> to vector<10x8xf32>
    %cst_19 = arith.constant 2.000000e+00 : f32
    %37 = vector.broadcast %cst_19 : f32 to vector<10x8xf32>
    %38 = arith.mulf %37, %35 : vector<10x8xf32>
    %39 = arith.addf %34, %38 : vector<10x8xf32>
    %40 = arith.addf %39, %36 : vector<10x8xf32>
    %41 = arith.subf %34, %36 : vector<10x8xf32>
    %42 = vector.extract_strided_slice %40 {offsets = [0, 0], sizes = [8, 8], strides = [1, 1]} : vector<10x8xf32> to vector<8x8xf32>
    %43 = vector.extract_strided_slice %40 {offsets = [2, 0], sizes = [8, 8], strides = [1, 1]} : vector<10x8xf32> to vector<8x8xf32>
    %44 = arith.subf %42, %43 : vector<8x8xf32>
    %45 = vector.extract_strided_slice %41 {offsets = [0, 0], sizes = [8, 8], strides = [1, 1]} : vector<10x8xf32> to vector<8x8xf32>
    %46 = vector.extract_strided_slice %41 {offsets = [1, 0], sizes = [8, 8], strides = [1, 1]} : vector<10x8xf32> to vector<8x8xf32>
    %cst_20 = arith.constant 2.000000e+00 : f32
    %47 = vector.broadcast %cst_20 : f32 to vector<8x8xf32>
    %48 = arith.mulf %47, %46 : vector<8x8xf32>
    %49 = arith.addf %45, %48 : vector<8x8xf32>
    %50 = vector.extract_strided_slice %41 {offsets = [2, 0], sizes = [8, 8], strides = [1, 1]} : vector<10x8xf32> to vector<8x8xf32>
    %51 = arith.addf %49, %50 : vector<8x8xf32>
    %52 = arith.mulf %51, %51 : vector<8x8xf32>
    %53 = arith.mulf %44, %44 : vector<8x8xf32>
    %54 = arith.addf %52, %53 : vector<8x8xf32>
    %55 = math.sqrt %54 : vector<8x8xf32>
    %56 = arith.mulf %32, %32 : vector<8x8xf32>
    %cst_21 = arith.constant dense<0.000000e+00> : vector<8xf32>
    %57 = vector.multi_reduction <add>, %56, %cst_21 [1] : vector<8x8xf32> to vector<8xf32>
    %58 = vector.shape_cast %57 : vector<8xf32> to vector<8x1xf32>
    %cst_22 = arith.constant dense<0.000000e+00> : vector<1xf32>
    %59 = vector.multi_reduction <add>, %58, %cst_22 [0] : vector<8x1xf32> to vector<1xf32>
    %60 = vector.shape_cast %59 : vector<1xf32> to vector<1x1xf32>
    %61 = arith.mulf %55, %55 : vector<8x8xf32>
    %cst_23 = arith.constant dense<0.000000e+00> : vector<8xf32>
    %62 = vector.multi_reduction <add>, %61, %cst_23 [1] : vector<8x8xf32> to vector<8xf32>
    %63 = vector.shape_cast %62 : vector<8xf32> to vector<8x1xf32>
    %cst_24 = arith.constant dense<0.000000e+00> : vector<1xf32>
    %64 = vector.multi_reduction <add>, %63, %cst_24 [0] : vector<8x1xf32> to vector<1xf32>
    %65 = vector.shape_cast %64 : vector<1xf32> to vector<1x1xf32>
    %66 = arith.divf %65, %60 : vector<1x1xf32>
    %67 = math.sqrt %66 : vector<1x1xf32>
    %68 = math.sqrt %67 : vector<1x1xf32>
    %cst_25 = arith.constant 1.000000e+00 : f32
    %69 = vector.broadcast %cst_25 : f32 to vector<1x1xf32>
    %70 = arith.divf %69, %68 : vector<1x1xf32>
    %71 = vector.broadcast %68 : vector<1x1xf32> to vector<8x8xf32>
    %72 = arith.mulf %32, %71 : vector<8x8xf32>
    %73 = math.tanh %72 : vector<8x8xf32>
    %74 = vector.broadcast %70 : vector<1x1xf32> to vector<8x8xf32>
    %75 = arith.mulf %55, %74 : vector<8x8xf32>
    %76 = math.tanh %75 : vector<8x8xf32>
    %77 = arith.mulf %73, %76 : vector<8x8xf32>
    %78 = arith.mulf %77, %77 : vector<8x8xf32>
    %cst_26 = arith.constant dense<0.000000e+00> : vector<8xf32>
    %79 = vector.multi_reduction <add>, %78, %cst_26 [1] : vector<8x8xf32> to vector<8xf32>
    %80 = vector.shape_cast %79 : vector<8xf32> to vector<8x1xf32>
    %cst_27 = arith.constant dense<0.000000e+00> : vector<1xf32>
    %81 = vector.multi_reduction <add>, %80, %cst_27 [0] : vector<8x1xf32> to vector<1xf32>
    %82 = vector.shape_cast %81 : vector<1xf32> to vector<1x1xf32>
    %83 = math.sqrt %82 : vector<1x1xf32>
    %84 = vector.shape_cast %83 : vector<1x1xf32> to vector<1x1x1xf32>
    %c0_28 = arith.constant 0 : index
    %c0_29 = arith.constant 0 : index
    %c0_30 = arith.constant 0 : index
    %85 = vector.load %arg3[%c0_28, %c0_29, %c0_30] : memref<1x1x1xf32, #tpu.memory_space<vmem>>, vector<1x1x1xf32>
    tpu.vector_store %arg3[%c0_28, %c0_29, %c0_30], %84 {strides = array<i32>} : memref<1x1x1xf32, #tpu.memory_space<vmem>>, vector<1x1x1xf32>,
    return
  }
  func.func @transform_0(%arg0: i32) -> (i32, i32, i32) {
    %c0_i32 = arith.constant 0 : i32
    %c0_i32_0 = arith.constant 0 : i32
    %c0_i32_1 = arith.constant 0 : i32
    return %arg0, %c0_i32, %c0_i32_0 : i32, i32, i32
  }
  func.func @transform_1(%arg0: i32) -> (i32, i32, i32) {
    %c0_i32 = arith.constant 0 : i32
    %c0_i32_0 = arith.constant 0 : i32
    %c0_i32_1 = arith.constant 0 : i32
    return %arg0, %c0_i32, %c0_i32_0 : i32, i32, i32
  }
  func.func @transform_2(%arg0: i32) -> (i32, i32, i32) {
    %c0_i32 = arith.constant 0 : i32
    %c0_i32_0 = arith.constant 0 : i32
    %c0_i32_1 = arith.constant 0 : i32
    return %arg0, %c0_i32, %c0_i32_0 : i32, i32, i32
  }
}

</mosaic_0001>

<bundles_post_ra>
// kernel: exclusion_loss.3
= control target key start
LH: loop header
LB: loop body
LE: loop exit
PB: predicated region body
PF: predicated region fallthrough
CT: control target
= control target key end

     0   :  { %s611_s9 = smov 0   ;;  %s681_s0 = inlined_call_operand.vmem [shape: f32[2,16,16], index: 0, kind: input, shape index: {}]   ;;  %s682_s1 = inlined_call_operand.vmem [shape: f32[2,16,16], index: 1, kind: input, shape index: {}]   ;;  %s683_s2 = inlined_call_operand.vmem [shape: f32[2,1,1], index: 2, kind: output, shape index: {}]  }
   0x1 LB: > { %s533_s10 = sadd.s32 4294967295, %s590_s9   ;;  %p537_p0 = scmp.ge.s32.totalorder %s590_s9, 1  ;;  %s590_s9 = sphi %s611_s9, %s12_s9  }
   0x2   : > { %p122_p1 = scmp.lt.s32.totalorder %s590_s9, 3 }
   0x4   : > { %p123_p2 = pnand %p537_p0, %p122_p1 }
   0x5   : > { %p147_p3 = scmp.lt.s32.totalorder (!%p123_p2), %s533_s10, 1  ;;  %vm160_vm0 = vcmask (!%p123_p2), 146432   ;;  %vm163_vm1 = vcmask (!%p123_p2), 140288   ;;  %v592_v0 = vmov (!%p123_p2), 0.0   ;;  %s593_s18 = smov (!%p123_p2), 1   ;;  %vm178_vm2 = vcmask (!%p123_p2), 138248  }
   0x6   : > { %126 = sbr.rel (%p123_p2) target bundleno = 700 (0x2bc), region = 28  ;;  %161 = vst.msk [vmem:[#allocation2] sm:$0xff] (!%p123_p2), %vm160_vm0, %v592_v0  ;;  %162 = vst.msk [vmem:[#allocation2 + $0x8] sm:$0xff] (!%p123_p2), %vm160_vm0, %v592_v0  ;;  %s594_s19 = smov (!%p123_p2), 126   ;;  %vm251_vm3 = vcmask (!%p123_p2), 1046528   ;;  %vm235_vm4 = vcmask (!%p123_p2), 1045504  }
   0x7   : > { %165 = vst.msk [vmem:[#allocation3] sm:$0xff] (!%p123_p2), %vm160_vm0, %v592_v0  ;;  %166 = vst.msk [vmem:[#allocation3 + $0x8] sm:$0xff] (!%p123_p2), %vm160_vm0, %v592_v0  ;;  %s595_s20 = smov (!%p123_p2), 127   ;;  %vm393_vm7 = vcmask (!%p123_p2), 130048  }
   0x8   : > { %164 = vst.msk [vmem:[#allocation2 + $0x10] sm:$0x3] (!%p123_p2), %vm163_vm1, %v592_v0  ;;  %167 = vst.msk [vmem:[#allocation3 + $0x10] sm:$0x3] (!%p123_p2), %vm163_vm1, %v592_v0 }
   0xd   : > { %s685_s10 = smov (!%p147_p3, %s533_s10), 1 }
   0xe   : > { %s544_s11 = sshll.u32 %s685_s10, 4  ;;  %s159_s23 = scalar_lea.vmem %s683_s2, %s685_s10 }
   0xf   : > { %s151_s14 = scalar_lea.vmem %s681_s0, %s544_s11  ;;  %s156_s17 = scalar_lea.vmem %s682_s1, %s544_s11 }
  0x10   : > { %v168_v1 = vld [vmem:[%s151_s14] sm:$0xff]  ;;  %v169_v3 = vld [vmem:[%s151_s14 + $0x8] sm:$0xff] }
  0x11   : > { %v181_v2 = vld [vmem:[%s156_s17] sm:$0xff]  ;;  %172 = vrot.lane.b32.xlu0 %v168_v1, %s593_s18  ;;  %v182_v4 = vld [vmem:[%s156_s17 + $0x8] sm:$0xff] }
  0x12   : > { %185 = vrot.lane.b32.xlu1 %v181_v2, %s593_s18 }
  0x15   : > { %174 = vrot.lane.b32.xlu0 %v169_v3, %s593_s18 }
  0x16   : > { %187 = vrot.lane.b32.xlu1 %v182_v4, %s593_s18 }
  0x83   : > { %v173_v5 = vpop.permute.xlu0 %172 }
  0x84   : > { %v186_v6 = vpop.permute.xlu1 %185  ;;  %179 = vst.msk [vmem:[#allocation2 + $0x1] sm:$0xff] %vm178_vm2, %v173_v5 }
  0x85   : > { %191 = vst.msk [vmem:[#allocation3 + $0x1] sm:$0xff] %vm178_vm2, %v186_v6 }
  0x87   : > { %v175_v7 = vpop.permute.xlu0 %174 }
  0x88   : > { %v188_v8 = vpop.permute.xlu1 %187  ;;  %180 = vst.msk [vmem:[#allocation2 + $0x9] sm:$0xff] %vm178_vm2, %v175_v7 }
  0x89   : > { %192 = vst.msk [vmem:[#allocation3 + $0x9] sm:$0xff] %vm178_vm2, %v188_v8  ;;  %vm472_vm2 = vcmask 0  }
  0x8b   : > { %v193_v9 = vld [vmem:[#allocation2] sm:$0xff] }
  0x8c   : > { %217 = vrot.lane.b32.xlu0 %v193_v9, %s594_s19  ;;  %v196_v12 = vmul.f32 2.0, %v193_v9  ;;  %v628_v14 = vld [vmem:[#allocation3] sm:$0xff] }
  0x8d   : > { %v296_v18 = vmul.f32 2.0, %v628_v14 }
  0x8f   : > { %v195_v10 = vld [vmem:[#allocation2 + $0x10] sm:$0x3]  ;;  %v194_v11 = vld [vmem:[#allocation2 + $0x8] sm:$0xff] }
  0x90   : > { %221 = vrot.lane.b32.xlu0 %v195_v10, %s594_s19  ;;  %219 = vrot.lane.b32.xlu1 %v194_v11, %s594_s19  ;;  %v197_v13 = vmul.f32 2.0, %v194_v11  ;;  %v198_v15 = vmul.f32 2.0, %v195_v10  ;;  %v631_v16 = vld [vmem:[#allocation3 + $0x10] sm:$0x3]  ;;  %v633_v17 = vld [vmem:[#allocation3 + $0x8] sm:$0xff] }
  0x91   : > { %v297_v19 = vmul.f32 2.0, %v633_v17  ;;  %v298_v20 = vmul.f32 2.0, %v631_v16 }
  0x94   : > { %202 = vrot.lane.b32.xlu1 %v196_v12, %s595_s20  ;;  %204 = vrot.lane.b32.xlu0 %v197_v13, %s595_s20 }
  0x98   : > { %206 = vrot.lane.b32.xlu1 %v198_v15, %s595_s20  ;;  %317 = vrot.lane.b32.xlu0 %v628_v14, %s594_s19 }
  0x9c   : > { %319 = vrot.lane.b32.xlu1 %v633_v17, %s594_s19  ;;  %321 = vrot.lane.b32.xlu0 %v631_v16, %s594_s19 }
  0xa0   : > { %302 = vrot.lane.b32.xlu1 %v296_v18, %s595_s20  ;;  %304 = vrot.lane.b32.xlu0 %v297_v19, %s595_s20 }
  0xa4   : > { %306 = vrot.lane.b32.xlu1 %v298_v20, %s595_s20 }
  0xfe   : > { %v218_v21 = vpop.permute.xlu0 %217 }
  0xff   : > { %v229_v22 = vsub.f32 %v193_v9, %v218_v21 }
 0x101   : > { %v245_v25 = vmul.f32 2.0, %v229_v22  ;;  %v264_v38 = vrot.slane %v229_v22, 2 }
 0x102   : > { %v220_v23 = vpop.permute.xlu1 %219  ;;  %v222_v24 = vpop.permute.xlu0 %221 }
 0x103   : > { %v230_v26 = vsub.f32 %v194_v11, %v220_v23  ;;  %v231_v27 = vsub.f32 %v195_v10, %v222_v24  ;;  %v252_v32 = vrot.slane %v245_v25, 1 }
 0x105   : > { %v246_v28 = vmul.f32 2.0, %v230_v26  ;;  %v247_v29 = vmul.f32 2.0, %v231_v27  ;;  %v265_v35 = vrot.slane %v230_v26, 2  ;;  %v267_v41 = vrot.slane %v231_v27, 2 }
 0x106   : > { %v203_v30 = vpop.permute.xlu1 %202  ;;  %v205_v31 = vpop.permute.xlu0 %204 }
 0x107   : > { %v253_v33 = vrot.slane %v246_v28, 1  ;;  %v255_v34 = vrot.slane %v247_v29, 1  ;;  %v211_v36 = vadd.f32 %v203_v30, %v193_v9  ;;  %v212_v37 = vadd.f32 %v205_v31, %v194_v11 }
 0x108   : > { %v266_v50 = vsel %vm235_vm4, %v264_v38, %v265_v35  ;;  %v268_v54 = vsel %vm235_vm4, %v265_v35, %v267_v41 }
 0x109   : > { %v254_v39 = vsel %vm251_vm3, %v252_v32, %v253_v33  ;;  %v256_v40 = vsel %vm251_vm3, %v253_v33, %v255_v34  ;;  %v226_v44 = vadd.f32 %v218_v21, %v211_v36  ;;  %v227_v45 = vadd.f32 %v220_v23, %v212_v37 }
 0x10a   : > { %v259_v42 = vadd.f32 %v254_v39, %v229_v22  ;;  %v260_v43 = vadd.f32 %v256_v40, %v230_v26  ;;  %v207_v46 = vpop.permute.xlu1 %206  ;;  %v318_v47 = vpop.permute.xlu0 %317 }
 0x10b   : > { %v213_v48 = vadd.f32 %v207_v46, %v195_v10  ;;  %v329_v49 = vsub.f32 %v628_v14, %v318_v47  ;;  %v236_v51 = vrot.slane %v226_v44, 2  ;;  %v237_v52 = vrot.slane %v227_v45, 2 }
 0x10c   : > { %v271_v53 = vadd.f32 %v266_v50, %v259_v42  ;;  %v272_v56 = vadd.f32 %v268_v54, %v260_v43 }
 0x10d   : > { %v228_v55 = vadd.f32 %v222_v24, %v213_v48  ;;  %v238_v57 = vsel %vm235_vm4, %v236_v51, %v237_v52  ;;  %v344_v62 = vmul.f32 2.0, %v329_v49  ;;  %v362_v21 = vrot.slane %v329_v49, 2 }
 0x10e   : > { %v320_v58 = vpop.permute.xlu1 %319  ;;  %v322_v59 = vpop.permute.xlu0 %321  ;;  %v243_v60 = vsub.f32 %v226_v44, %v238_v57  ;;  %v273_v1 = vmul.f32 %v271_v53, %v271_v53  ;;  %v274_v5 = vmul.f32 %v272_v56, %v272_v56 }
 0x10f   : > { %v239_v61 = vrot.slane %v228_v55, 2  ;;  %v330_v63 = vsub.f32 %v633_v17, %v320_v58  ;;  %v331_v0 = vsub.f32 %v631_v16, %v322_v59  ;;  %v350_v11 = vrot.slane %v344_v62, 1 }
 0x110   : > { %v275_v2 = vmul.f32 %v243_v60, %v243_v60 }
 0x111   : > { %v240_v3 = vsel %vm235_vm4, %v237_v52, %v239_v61  ;;  %v345_v4 = vmul.f32 2.0, %v330_v63  ;;  %v346_v7 = vmul.f32 2.0, %v331_v0  ;;  %v363_v18 = vrot.slane %v330_v63, 2 }
 0x112   : > { %v244_v6 = vsub.f32 %v227_v45, %v240_v3  ;;  %v303_v8 = vpop.permute.xlu1 %302  ;;  %v305_v9 = vpop.permute.xlu0 %304  ;;  %v277_v10 = vadd.f32 %v275_v2, %v273_v1  ;;  %v365_v29 = vrot.slane %v331_v0, 2 }
 0x113   : > { %v351_v12 = vrot.slane %v345_v4, 1  ;;  %v311_v13 = vadd.f32 %v303_v8, %v628_v14  ;;  %v353_v19 = vrot.slane %v346_v7, 1  ;;  %v312_v20 = vadd.f32 %v305_v9, %v633_v17 }
 0x114   : > { %v276_v15 = vmul.f32 %v244_v6, %v244_v6  ;;  %558 = vrsqrt.f32 %v277_v10  ;;  %v364_v31 = vsel %vm235_vm4, %v362_v21, %v363_v18  ;;  %v366_v36 = vsel %vm235_vm4, %v363_v18, %v365_v29 }
 0x115   : > { %v352_v22 = vsel %vm251_vm3, %v350_v11, %v351_v12  ;;  %v326_v23 = vadd.f32 %v318_v47, %v311_v13  ;;  %v354_v26 = vsel %vm251_vm3, %v351_v12, %v353_v19  ;;  %v327_v27 = vadd.f32 %v320_v58, %v312_v20 }
 0x116   : > { %v278_v24 = vadd.f32 %v276_v15, %v274_v5  ;;  %v357_v25 = vadd.f32 %v352_v22, %v329_v49  ;;  %v307_v28 = vpop.permute.xlu1 %306  ;;  %v358_v32 = vadd.f32 %v354_v26, %v330_v63  ;;  %vm281_vm5 = vcmp.eq.f32.partialorder %v277_v10, inf }
 0x117   : > { %v335_v30 = vrot.slane %v326_v23, 2  ;;  %v313_v14 = vadd.f32 %v307_v28, %v631_v16  ;;  %v336_v33 = vrot.slane %v327_v27, 2  ;;  %v284_v48 = vand.u32 2147483648, %v277_v10 }
 0x118   : > { %560 = vrsqrt.f32 %v278_v24  ;;  %v369_v17 = vadd.f32 %v364_v31, %v357_v25  ;;  %v370_v39 = vadd.f32 %v366_v36, %v358_v32  ;;  %vm283_vm6 = vcmp.eq.f32.partialorder %v277_v10, 0.0 }
 0x119   : > { %v328_v34 = vadd.f32 %v322_v59, %v313_v14  ;;  %v337_v35 = vsel %vm235_vm4, %v335_v30, %v336_v33  ;;  %vm288_vm8 = vcmp.eq.f32.partialorder %v278_v24, inf  ;;  %v291_v55 = vand.u32 2147483648, %v278_v24 }
 0x11a   : > { %v342_v37 = vsub.f32 %v326_v23, %v337_v35  ;;  %v371_v40 = vmul.f32 %v369_v17, %v369_v17  ;;  %v372_v45 = vmul.f32 %v370_v39, %v370_v39  ;;  %vm290_vm9 = vcmp.eq.f32.partialorder %v278_v24, 0.0 }
 0x11b   : > { %v338_v38 = vrot.slane %v328_v34, 2 }
 0x11c   : > { %v373_v41 = vmul.f32 %v342_v37, %v342_v37 }
 0x11d   : > { %v339_v42 = vsel %vm235_vm4, %v336_v33, %v338_v38 }
 0x11e   : > { %v343_v43 = vsub.f32 %v327_v27, %v339_v42  ;;  %v559_v16 = vpop.eup %558  ;;  %v375_v44 = vadd.f32 %v373_v41, %v371_v40 }
 0x11f   : > { %v280_v47 = vmul.f32 %v559_v16, %v277_v10 }
 0x120   : > { %v374_v46 = vmul.f32 %v343_v43, %v343_v43  ;;  %562 = vrsqrt.f32 %v375_v44  ;;  %vm379_vm10 = vcmp.eq.f32.partialorder %v375_v44, inf  ;;  %v382_v63 = vand.u32 2147483648, %v375_v44 }
 0x121   : > { %v282_v51 = vsel %vm281_vm5, %v277_v10, %v280_v47  ;;  %vm381_vm11 = vcmp.eq.f32.partialorder %v375_v44, 0.0 }
 0x122   : > { %v561_v49 = vpop.eup %560  ;;  %v376_v50 = vadd.f32 %v374_v46, %v372_v45  ;;  %v658_v52 = vsel %vm283_vm6, %v284_v48, %v282_v51 }
 0x123   : > { %v287_v53 = vmul.f32 %v561_v49, %v278_v24  ;;  %v391_v54 = vmul.f32 %v658_v52, %v658_v52 }
 0x124   : > { %564 = vrsqrt.f32 %v376_v50  ;;  %vm386_vm12 = vcmp.eq.f32.partialorder %v376_v50, inf  ;;  %v389_v5 = vand.u32 2147483648, %v376_v50  ;;  %vm388_vm13 = vcmp.eq.f32.partialorder %v376_v50, 0.0 }
 0x125   : > { %v289_v56 = vsel %vm288_vm8, %v278_v24, %v287_v53  ;;  %v394_v57 = vsel %vm393_vm7, %v391_v54, 0.0 }
 0x126   : > { %v663_v58 = vsel %vm290_vm9, %v291_v55, %v289_v56  ;;  %395 = vadd.xlane.f32.xlu0 %v394_v57 }
 0x127   : > { %v392_v59 = vmul.f32 %v663_v58, %v663_v58 }
 0x129   : > { %v397_v60 = vsel %vm393_vm7, %v392_v59, 0.0 }
 0x12a   : > { %398 = vadd.xlane.f32.xlu1 %v397_v60  ;;  %v563_v61 = vpop.eup %562 }
 0x12b   : > { %v378_v62 = vmul.f32 %v563_v61, %v375_v44 }
 0x12d   : > { %v380_v1 = vsel %vm379_vm10, %v375_v44, %v378_v62 }
 0x12e   : > { %v565_v0 = vpop.eup %564  ;;  %v383_v2 = vsel %vm381_vm11, %v382_v63, %v380_v1 }
 0x12f   : > { %v385_v3 = vmul.f32 %v565_v0, %v376_v50  ;;  %v407_v4 = vmul.f32 %v383_v2, %v383_v2 }
 0x131   : > { %v387_v6 = vsel %vm386_vm12, %v376_v50, %v385_v3  ;;  %v409_v7 = vsel %vm393_vm7, %v407_v4, 0.0 }
 0x132   : > { %v390_v8 = vsel %vm388_vm13, %v389_v5, %v387_v6  ;;  %410 = vadd.xlane.f32.xlu0 %v409_v7 }
 0x133   : > { %v408_v9 = vmul.f32 %v390_v8, %v390_v8 }
 0x135   : > { %v412_v10 = vsel %vm393_vm7, %v408_v9, 0.0 }
 0x136   : > { %413 = vadd.xlane.f32.xlu0 %v412_v10 }
 0x1b3   : > { %v396_v11 = vpop.xlane.xlu0 %395 }
 0x1b7   : > { %v399_v12 = vpop.xlane.xlu1 %398 }
 0x1b8   : > { %v400_v13 = vadd.f32 %v399_v12, %v396_v11 }
 0x1ba   : > { %v401_v15 = vrot.slane %v400_v13, 4 }
 0x1bc   : > { %v402_v18 = vadd.f32 %v401_v15, %v400_v13 }
 0x1be   : > { %v403_v19 = vrot.slane %v402_v18, 2 }
 0x1bf   : > { %v411_v21 = vpop.xlane.xlu0 %410 }
 0x1c0   : > { %v404_v20 = vadd.f32 %v403_v19, %v402_v18 }
 0x1c2   : > { %v405_v22 = vrot.slane %v404_v20, 1 }
 0x1c3   : > { %v414_v24 = vpop.xlane.xlu0 %413 }
 0x1c4   : > { %v406_v23 = vadd.f32 %v405_v22, %v404_v20  ;;  %v415_v25 = vadd.f32 %v414_v24, %v411_v21 }
 0x1c6   : > { %566 = vrcp.f32 %v406_v23  ;;  %v416_v26 = vrot.slane %v415_v25, 4 }
 0x1c8   : > { %v417_v27 = vadd.f32 %v416_v26, %v415_v25 }
 0x1ca   : > { %v418_v28 = vrot.slane %v417_v27, 2 }
 0x1cc   : > { %v419_v29 = vadd.f32 %v418_v28, %v417_v27 }
 0x1ce   : > { %v420_v30 = vrot.slane %v419_v29, 1 }
 0x1d0   : > { %v567_v14 = vpop.eup %566  ;;  %v421_v31 = vadd.f32 %v420_v30, %v419_v29 }
 0x1d2   : > { %v423_v32 = vmul.f32 %v567_v14, %v421_v31 }
 0x1d4   : > { %568 = vrsqrt.f32 %v423_v32  ;;  %vm426_vm14 = vcmp.eq.f32.partialorder %v423_v32, inf  ;;  %v429_v34 = vand.u32 2147483648, %v423_v32  ;;  %vm428_vm15 = vcmp.eq.f32.partialorder %v423_v32, 0.0 }
 0x1de   : > { %v569_v33 = vpop.eup %568 }
 0x1df   : > { %v425_v17 = vmul.f32 %v569_v33, %v423_v32 }
 0x1e1   : > { %v427_v35 = vsel %vm426_vm14, %v423_v32, %v425_v17 }
 0x1e2   : > { %v430_v36 = vsel %vm428_vm15, %v429_v34, %v427_v35 }
 0x1e3   : > { %570 = vrsqrt.f32 %v430_v36  ;;  %vm433_vm0 = vcmp.eq.f32.partialorder %v430_v36, inf  ;;  %v436_v39 = vand.u32 2147483648, %v430_v36  ;;  %vm435_vm1 = vcmp.eq.f32.partialorder %v430_v36, 0.0 }
 0x1ed   : > { %v571_v37 = vpop.eup %570 }
 0x1ee   : > { %v432_v38 = vmul.f32 %v571_v37, %v430_v36 }
 0x1f0   : > { %v434_v40 = vsel %vm433_vm0, %v430_v36, %v432_v38 }
 0x1f1   : > { %v437_v41 = vsel %vm435_vm1, %v436_v39, %v434_v40 }
 0x1f2   : > { %572 = vrcp.f32 %v437_v41  ;;  %v441_v42 = vmul.f32 %v437_v41, %v663_v58  ;;  %v440_v43 = vmul.f32 %v437_v41, %v658_v52 }
 0x1f4   : > { %574 = vtanh.f32 %v441_v42 }
 0x1f5   : > { %576 = vtanh.f32 %v440_v43 }
 0x1fc   : > { %v573_v16 = vpop.eup %572 }
 0x1fd   : > { %v445_v44 = vmul.f32 %v573_v16, %v390_v8  ;;  %v444_v45 = vmul.f32 %v573_v16, %v383_v2 }
 0x1fe   : > { %v575_v46 = vpop.eup %574 }
 0x1ff   : > { %578 = vtanh.f32 %v445_v44  ;;  %v577_v47 = vpop.eup %576 }
 0x200   : > { %580 = vtanh.f32 %v444_v45 }
 0x209   : > { %v579_v48 = vpop.eup %578 }
 0x20a   : > { %v581_v49 = vpop.eup %580  ;;  %v449_v50 = vmul.f32 %v579_v48, %v575_v46 }
 0x20b   : > { %v448_v51 = vmul.f32 %v581_v49, %v577_v47 }
 0x20c   : > { %v451_v53 = vmul.f32 %v449_v50, %v449_v50 }
 0x20d   : > { %v450_v54 = vmul.f32 %v448_v51, %v448_v51 }
 0x20e   : > { %v455_v55 = vsel %vm393_vm7, %v451_v53, 0.0 }
 0x20f   : > { %456 = vadd.xlane.f32.xlu0 %v455_v55  ;;  %v452_v52 = vsel %vm393_vm7, %v450_v54, 0.0 }
 0x210   : > { %453 = vadd.xlane.f32.xlu1 %v452_v52 }
 0x29c   : > { %v457_v56 = vpop.xlane.xlu0 %456 }
 0x29d   : > { %v454_v57 = vpop.xlane.xlu1 %453 }
 0x29e   : > { %v458_v58 = vadd.f32 %v457_v56, %v454_v57 }
 0x2a0   : > { %v459_v59 = vrot.slane %v458_v58, 4 }
 0x2a2   : > { %v460_v60 = vadd.f32 %v459_v59, %v458_v58 }
 0x2a4   : > { %v461_v61 = vrot.slane %v460_v60, 2 }
 0x2a6   : > { %v462_v62 = vadd.f32 %v461_v61, %v460_v60 }
 0x2a8   : > { %v463_v63 = vrot.slane %v462_v62, 1 }
 0x2aa   : > { %v464_v0 = vadd.f32 %v463_v63, %v462_v62 }
 0x2ac   : > { %582 = vrsqrt.f32 %v464_v0  ;;  %vm467_vm3 = vcmp.eq.f32.partialorder %v464_v0, inf  ;;  %v470_v3 = vand.u32 2147483648, %v464_v0  ;;  %vm469_vm4 = vcmp.eq.f32.partialorder %v464_v0, 0.0 }
 0x2b6   : > { %v583_v1 = vpop.eup %582 }
 0x2b7   : > { %v466_v2 = vmul.f32 %v583_v1, %v464_v0 }
 0x2b9   : > { %v468_v4 = vsel %vm467_vm3, %v464_v0, %v466_v2 }
 0x2ba   : > { %v471_v5 = vsel %vm469_vm4, %v470_v3, %v468_v4 }
 0x2bb   : > { %473 = vst.msk [vmem:[%s159_s23] sm:$0x1] %vm472_vm2, %v471_v5 }
 0x2bc PF: > { %s12_s9 = sadd.s32 1, %s590_s9  }
 0x2bd   : > { %p9_p4 = scmp.ge.s32.totalorder %s12_s9, 4  }
 0x2bf   :  { %11 = sbr.rel (!%p9_p4) target bundleno = 1 (0x1), region = 61 }

// kernel: exclusion_loss.5
= control target key start
LH: loop header
LB: loop body
LE: loop exit
PB: predicated region body
PF: predicated region fallthrough
CT: control target
= control target key end

     0   :  { %s434_s9 = smov 0   ;;  %s464_s0 = inlined_call_operand.vmem [shape: f32[2,4,4], index: 0, kind: input, shape index: {}]   ;;  %s465_s1 = inlined_call_operand.vmem [shape: f32[2,4,4], index: 1, kind: input, shape index: {}]   ;;  %s466_s2 = inlined_call_operand.vmem [shape: f32[2,1,1], index: 2, kind: output, shape index: {}]  }
   0x1 LB: > { %s368_s10 = sadd.s32 4294967295, %s413_s9   ;;  %p372_p0 = scmp.ge.s32.totalorder %s413_s9, 1  ;;  %s413_s9 = sphi %s434_s9, %s12_s9  }
   0x2   : > { %p120_p1 = scmp.lt.s32.totalorder %s413_s9, 3 }
   0x4   : > { %p121_p2 = pnand %p372_p0, %p120_p1 }
   0x5   : > { %p143_p3 = scmp.lt.s32.totalorder (!%p121_p2), %s368_s10, 1  ;;  %vm154_vm0 = vcmask (!%p121_p2), 46080   ;;  %v415_v0 = vmov (!%p121_p2), 0.0   ;;  %s416_s18 = smov (!%p121_p2), 1   ;;  %vm162_vm1 = vcmask (!%p121_p2), 35848   ;;  %vm243_vm4 = vcmask (!%p121_p2), 27648  }
   0x6   : > { %124 = sbr.rel (%p121_p2) target bundleno = 687 (0x2af), region = 28  ;;  %155 = vst.msk [vmem:[#allocation2] sm:$0x3f] (!%p121_p2), %vm154_vm0, %v415_v0  ;;  %156 = vst.msk [vmem:[#allocation3] sm:$0x3f] (!%p121_p2), %vm154_vm0, %v415_v0  ;;  %s417_s19 = smov (!%p121_p2), 126  }
   0x7   : > { %s418_s20 = smov (!%p121_p2), 127   ;;  %vm247_vm7 = vcmask (!%p121_p2), 1043456   ;;  %vm307_vm12 = vcmask (!%p121_p2), 0  }
   0xd   : > { %s468_s10 = smov (!%p143_p3, %s368_s10), 1 }
   0xe   : > { %s373_s11 = sshll.u32 %s468_s10, 2  ;;  %s153_s23 = scalar_lea.vmem %s466_s2, %s468_s10 }
   0xf   : > { %s146_s14 = scalar_lea.vmem %s464_s0, %s373_s11  ;;  %s150_s17 = scalar_lea.vmem %s465_s1, %s373_s11 }
  0x10   : > { %v157_v1 = vld [vmem:[%s146_s14] sm:$0xf] }
  0x11   : > { %159 = vrot.lane.b32.xlu0 %v157_v1, %s416_s18  ;;  %v164_v2 = vld [vmem:[%s150_s17] sm:$0xf] }
  0x15   : > { %166 = vrot.lane.b32.xlu0 %v164_v2, %s416_s18 }
  0x83   : > { %v160_v3 = vpop.permute.xlu0 %159 }
  0x84   : > { %163 = vst.msk [vmem:[#allocation2 + $0x1] sm:$0xf] %vm162_vm1, %v160_v3 }
  0x87   : > { %v167_v4 = vpop.permute.xlu0 %166 }
  0x88   : > { %169 = vst.msk [vmem:[#allocation3 + $0x1] sm:$0xf] %vm162_vm1, %v167_v4 }
  0x8b   : > { %v170_v5 = vld [vmem:[#allocation2] sm:$0x3f] }
  0x8c   : > { %178 = vrot.lane.b32.xlu1 %v170_v5, %s417_s19  ;;  %v171_v6 = vmul.f32 2.0, %v170_v5 }
  0x8f   : > { %v206_v7 = vld [vmem:[#allocation3] sm:$0x3f] }
  0x90   : > { %173 = vrot.lane.b32.xlu1 %v171_v6, %s418_s20  ;;  %214 = vrot.lane.b32.xlu0 %v206_v7, %s417_s19  ;;  %v207_v8 = vmul.f32 2.0, %v206_v7 }
  0x94   : > { %209 = vrot.lane.b32.xlu1 %v207_v8, %s418_s20 }
  0xfe   : > { %v179_v9 = vpop.permute.xlu1 %178 }
  0xff   : > { %v182_v10 = vsub.f32 %v170_v5, %v179_v9 }
 0x101   : > { %v187_v11 = vmul.f32 2.0, %v182_v10  ;;  %v193_v18 = vrot.slane %v182_v10, 2 }
 0x102   : > { %v174_v12 = vpop.permute.xlu1 %173  ;;  %v215_v13 = vpop.permute.xlu0 %214 }
 0x103   : > { %v189_v14 = vrot.slane %v187_v11, 1  ;;  %v176_v15 = vadd.f32 %v174_v12, %v170_v5  ;;  %v218_v16 = vsub.f32 %v206_v7, %v215_v13 }
 0x105   : > { %v191_v17 = vadd.f32 %v189_v14, %v182_v10  ;;  %v181_v19 = vadd.f32 %v179_v9, %v176_v15  ;;  %v223_v20 = vmul.f32 2.0, %v218_v16  ;;  %v229_v28 = vrot.slane %v218_v16, 2 }
 0x106   : > { %v210_v21 = vpop.permute.xlu1 %209 }
 0x107   : > { %v195_v22 = vadd.f32 %v193_v18, %v191_v17  ;;  %v184_v23 = vrot.slane %v181_v19, 2  ;;  %v225_v24 = vrot.slane %v223_v20, 1  ;;  %v212_v25 = vadd.f32 %v210_v21, %v206_v7 }
 0x109   : > { %v186_v26 = vsub.f32 %v181_v19, %v184_v23  ;;  %v227_v27 = vadd.f32 %v225_v24, %v218_v16  ;;  %v217_v29 = vadd.f32 %v215_v13, %v212_v25  ;;  %v196_v30 = vmul.f32 %v195_v22, %v195_v22 }
 0x10b   : > { %v197_v31 = vmul.f32 %v186_v26, %v186_v26  ;;  %v231_v32 = vadd.f32 %v229_v28, %v227_v27  ;;  %v220_v33 = vrot.slane %v217_v29, 2 }
 0x10d   : > { %v198_v34 = vadd.f32 %v197_v31, %v196_v30  ;;  %v222_v35 = vsub.f32 %v217_v29, %v220_v33  ;;  %v232_v36 = vmul.f32 %v231_v32, %v231_v32 }
 0x10f   : > { %v233_v37 = vmul.f32 %v222_v35, %v222_v35  ;;  %389 = vrsqrt.f32 %v198_v34  ;;  %vm201_vm2 = vcmp.eq.f32.partialorder %v198_v34, inf  ;;  %v204_v41 = vand.u32 2147483648, %v198_v34 }
 0x110   : > { %vm203_vm3 = vcmp.eq.f32.partialorder %v198_v34, 0.0 }
 0x111   : > { %v234_v38 = vadd.f32 %v233_v37, %v232_v36 }
 0x113   : > { %391 = vrsqrt.f32 %v234_v38  ;;  %vm237_vm5 = vcmp.eq.f32.partialorder %v234_v38, inf  ;;  %v240_v47 = vand.u32 2147483648, %v234_v38  ;;  %vm239_vm6 = vcmp.eq.f32.partialorder %v234_v38, 0.0 }
 0x119   : > { %v390_v39 = vpop.eup %389 }
 0x11a   : > { %v200_v40 = vmul.f32 %v390_v39, %v198_v34 }
 0x11c   : > { %v202_v42 = vsel %vm201_vm2, %v198_v34, %v200_v40 }
 0x11d   : > { %v392_v43 = vpop.eup %391  ;;  %v205_v44 = vsel %vm203_vm3, %v204_v41, %v202_v42 }
 0x11e   : > { %v242_v45 = vmul.f32 %v205_v44, %v205_v44  ;;  %v236_v46 = vmul.f32 %v392_v43, %v234_v38 }
 0x120   : > { %v244_v48 = vsel %vm243_vm4, %v242_v45, 0.0  ;;  %v238_v49 = vsel %vm237_vm5, %v234_v38, %v236_v46 }
 0x121   : > { %245 = vadd.xlane.f32.xlu0 %v244_v48  ;;  %v241_v50 = vsel %vm239_vm6, %v240_v47, %v238_v49 }
 0x122   : > { %v255_v51 = vmul.f32 %v241_v50, %v241_v50 }
 0x124   : > { %v256_v52 = vsel %vm243_vm4, %v255_v51, 0.0 }
 0x125   : > { %257 = vadd.xlane.f32.xlu1 %v256_v52 }
 0x1ae   : > { %v246_v53 = vpop.xlane.xlu0 %245 }
 0x1af   : > { %v248_v54 = vsel %vm247_vm7, %v246_v53, 0.0 }
 0x1b0   : > { %v249_v55 = vrot.slane %v248_v54, 4 }
 0x1b2   : > { %v250_v56 = vadd.f32 %v249_v55, %v248_v54  ;;  %v258_v57 = vpop.xlane.xlu1 %257 }
 0x1b3   : > { %v259_v58 = vsel %vm247_vm7, %v258_v57, 0.0 }
 0x1b4   : > { %v251_v59 = vrot.slane %v250_v56, 2  ;;  %v260_v60 = vrot.slane %v259_v58, 4 }
 0x1b6   : > { %v252_v61 = vadd.f32 %v251_v59, %v250_v56  ;;  %v261_v62 = vadd.f32 %v260_v60, %v259_v58 }
 0x1b8   : > { %v253_v63 = vrot.slane %v252_v61, 1  ;;  %v262_v0 = vrot.slane %v261_v62, 2 }
 0x1ba   : > { %v254_v1 = vadd.f32 %v253_v63, %v252_v61  ;;  %v263_v2 = vadd.f32 %v262_v0, %v261_v62 }
 0x1bc   : > { %393 = vrcp.f32 %v254_v1  ;;  %v264_v3 = vrot.slane %v263_v2, 1 }
 0x1be   : > { %v265_v4 = vadd.f32 %v264_v3, %v263_v2 }
 0x1c6   : > { %v394_v5 = vpop.eup %393 }
 0x1c7   : > { %v267_v6 = vmul.f32 %v394_v5, %v265_v4 }
 0x1c9   : > { %395 = vrsqrt.f32 %v267_v6  ;;  %vm270_vm8 = vcmp.eq.f32.partialorder %v267_v6, inf  ;;  %v273_v9 = vand.u32 2147483648, %v267_v6  ;;  %vm272_vm9 = vcmp.eq.f32.partialorder %v267_v6, 0.0 }
 0x1d3   : > { %v396_v7 = vpop.eup %395 }
 0x1d4   : > { %v269_v8 = vmul.f32 %v396_v7, %v267_v6 }
 0x1d6   : > { %v271_v10 = vsel %vm270_vm8, %v267_v6, %v269_v8 }
 0x1d7   : > { %v274_v11 = vsel %vm272_vm9, %v273_v9, %v271_v10 }
 0x1d8   : > { %397 = vrsqrt.f32 %v274_v11  ;;  %vm277_vm10 = vcmp.eq.f32.partialorder %v274_v11, inf  ;;  %v280_v14 = vand.u32 2147483648, %v274_v11  ;;  %vm279_vm11 = vcmp.eq.f32.partialorder %v274_v11, 0.0 }
 0x1e2   : > { %v398_v12 = vpop.eup %397 }
 0x1e3   : > { %v276_v13 = vmul.f32 %v398_v12, %v274_v11 }
 0x1e5   : > { %v278_v15 = vsel %vm277_vm10, %v274_v11, %v276_v13 }
 0x1e6   : > { %v281_v16 = vsel %vm279_vm11, %v280_v14, %v278_v15 }
 0x1e7   : > { %399 = vrcp.f32 %v281_v16  ;;  %v284_v17 = vmul.f32 %v281_v16, %v205_v44 }
 0x1e9   : > { %401 = vtanh.f32 %v284_v17 }
 0x1f1   : > { %v400_v18 = vpop.eup %399 }
 0x1f2   : > { %v286_v19 = vmul.f32 %v400_v18, %v241_v50 }
 0x1f3   : > { %v402_v20 = vpop.eup %401 }
 0x1f4   : > { %403 = vtanh.f32 %v286_v19 }
 0x1fe   : > { %v404_v21 = vpop.eup %403 }
 0x1ff   : > { %v288_v22 = vmul.f32 %v404_v21, %v402_v20 }
 0x201   : > { %v289_v23 = vmul.f32 %v288_v22, %v288_v22 }
 0x203   : > { %v290_v24 = vsel %vm243_vm4, %v289_v23, 0.0 }
 0x204   : > { %291 = vadd.xlane.f32.xlu0 %v290_v24 }
 0x291   : > { %v292_v25 = vpop.xlane.xlu0 %291 }
 0x292   : > { %v293_v26 = vsel %vm247_vm7, %v292_v25, 0.0 }
 0x293   : > { %v294_v27 = vrot.slane %v293_v26, 4 }
 0x295   : > { %v295_v28 = vadd.f32 %v294_v27, %v293_v26 }
 0x297   : > { %v296_v29 = vrot.slane %v295_v28, 2 }
 0x299   : > { %v297_v30 = vadd.f32 %v296_v29, %v295_v28 }
 0x29b   : > { %v298_v31 = vrot.slane %v297_v30, 1 }
 0x29d   : > { %v299_v32 = vadd.f32 %v298_v31, %v297_v30 }
 0x29f   : > { %405 = vrsqrt.f32 %v299_v32  ;;  %vm302_vm13 = vcmp.eq.f32.partialorder %v299_v32, inf  ;;  %v305_v35 = vand.u32 2147483648, %v299_v32  ;;  %vm304_vm14 = vcmp.eq.f32.partialorder %v299_v32, 0.0 }
 0x2a9   : > { %v406_v33 = vpop.eup %405 }
 0x2aa   : > { %v301_v34 = vmul.f32 %v406_v33, %v299_v32 }
 0x2ac   : > { %v303_v36 = vsel %vm302_vm13, %v299_v32, %v301_v34 }
 0x2ad   : > { %v306_v37 = vsel %vm304_vm14, %v305_v35, %v303_v36 }
 0x2ae   : > { %308 = vst.msk [vmem:[%s153_s23] sm:$0x1] %vm307_vm12, %v306_v37 }
 0x2af PF: > { %s12_s9 = sadd.s32 1, %s413_s9  }
 0x2b0   : > { %p9_p4 = scmp.ge.s32.totalorder %s12_s9, 4  }
 0x2b2   :  { %11 = sbr.rel (!%p9_p4) target bundleno = 1 (0x1), region = 61 }

// kernel: exclusion_loss.4
= control target key start
LH: loop header
LB: loop body
LE: loop exit
PB: predicated region body
PF: predicated region fallthrough
CT: control target
= control target key end

     0   :  { %s481_s9 = smov 0   ;;  %s514_s0 = inlined_call_operand.vmem [shape: f32[2,8,8], index: 0, kind: input, shape index: {}]   ;;  %s515_s1 = inlined_call_operand.vmem [shape: f32[2,8,8], index: 1, kind: input, shape index: {}]   ;;  %s516_s2 = inlined_call_operand.vmem [shape: f32[2,1,1], index: 2, kind: output, shape index: {}]  }
   0x1 LB: > { %s415_s10 = sadd.s32 4294967295, %s460_s9   ;;  %p419_p0 = scmp.ge.s32.totalorder %s460_s9, 1  ;;  %s460_s9 = sphi %s481_s9, %s12_s9  }
   0x2   : > { %p120_p1 = scmp.lt.s32.totalorder %s460_s9, 3 }
   0x4   : > { %p121_p2 = pnand %p419_p0, %p120_p1 }
   0x5   : > { %p143_p3 = scmp.lt.s32.totalorder (!%p121_p2), %s415_s10, 1  ;;  %vm154_vm0 = vcmask (!%p121_p2), 80896   ;;  %vm156_vm1 = vcmask (!%p121_p2), 74752   ;;  %v462_v0 = vmov (!%p121_p2), 0.0   ;;  %s463_s18 = smov (!%p121_p2), 1   ;;  %vm165_vm2 = vcmask (!%p121_p2), 72712  }
   0x6   : > { %124 = sbr.rel (%p121_p2) target bundleno = 690 (0x2b2), region = 28  ;;  %155 = vst.msk [vmem:[#allocation2] sm:$0xff] (!%p121_p2), %vm154_vm0, %v462_v0  ;;  %158 = vst.msk [vmem:[#allocation3] sm:$0xff] (!%p121_p2), %vm154_vm0, %v462_v0  ;;  %s464_s19 = smov (!%p121_p2), 126   ;;  %vm211_vm3 = vcmask (!%p121_p2), 1046528   ;;  %vm201_vm4 = vcmask (!%p121_p2), 1045504  }
   0x7   : > { %157 = vst.msk [vmem:[#allocation2 + $0x8] sm:$0x3] (!%p121_p2), %vm156_vm1, %v462_v0  ;;  %159 = vst.msk [vmem:[#allocation3 + $0x8] sm:$0x3] (!%p121_p2), %vm156_vm1, %v462_v0  ;;  %s465_s20 = smov (!%p121_p2), 127   ;;  %vm294_vm7 = vcmask (!%p121_p2), 64512  }
   0x8   : > { %vm354_vm14 = vcmask (!%p121_p2), 0  }
   0xd   : > { %s518_s10 = smov (!%p143_p3, %s415_s10), 1 }
   0xe   : > { %s420_s11 = sshll.u32 %s518_s10, 3  ;;  %s153_s23 = scalar_lea.vmem %s516_s2, %s518_s10 }
   0xf   : > { %s146_s14 = scalar_lea.vmem %s514_s0, %s420_s11  ;;  %s150_s17 = scalar_lea.vmem %s515_s1, %s420_s11 }
  0x10   : > { %v160_v1 = vld [vmem:[%s146_s14] sm:$0xff] }
  0x11   : > { %162 = vrot.lane.b32.xlu0 %v160_v1, %s463_s18  ;;  %v167_v2 = vld [vmem:[%s150_s17] sm:$0xff] }
  0x15   : > { %169 = vrot.lane.b32.xlu0 %v167_v2, %s463_s18 }
  0x83   : > { %v163_v3 = vpop.permute.xlu0 %162 }
  0x84   : > { %166 = vst.msk [vmem:[#allocation2 + $0x1] sm:$0xff] %vm165_vm2, %v163_v3 }
  0x87   : > { %v170_v4 = vpop.permute.xlu0 %169 }
  0x88   : > { %172 = vst.msk [vmem:[#allocation3 + $0x1] sm:$0xff] %vm165_vm2, %v170_v4 }
  0x8b   : > { %v173_v5 = vld [vmem:[#allocation2] sm:$0xff]  ;;  %v174_v7 = vld [vmem:[#allocation2 + $0x8] sm:$0x3] }
  0x8c   : > { %189 = vrot.lane.b32.xlu1 %v173_v5, %s464_s19  ;;  %v175_v6 = vmul.f32 2.0, %v173_v5  ;;  %v176_v9 = vmul.f32 2.0, %v174_v7 }
  0x8e   : > { %179 = vrot.lane.b32.xlu0 %v175_v6, %s465_s20 }
  0x8f   : > { %v234_v8 = vld [vmem:[#allocation3] sm:$0xff]  ;;  %v235_v11 = vld [vmem:[#allocation3 + $0x8] sm:$0x3] }
  0x90   : > { %191 = vrot.lane.b32.xlu1 %v174_v7, %s464_s19  ;;  %v236_v10 = vmul.f32 2.0, %v234_v8  ;;  %v237_v12 = vmul.f32 2.0, %v235_v11 }
  0x92   : > { %250 = vrot.lane.b32.xlu0 %v234_v8, %s464_s19 }
  0x94   : > { %181 = vrot.lane.b32.xlu1 %v176_v9, %s465_s20 }
  0x96   : > { %240 = vrot.lane.b32.xlu0 %v236_v10, %s465_s20 }
  0x98   : > { %252 = vrot.lane.b32.xlu1 %v235_v11, %s464_s19 }
  0x9c   : > { %242 = vrot.lane.b32.xlu1 %v237_v12, %s465_s20 }
  0xfe   : > { %v190_v13 = vpop.permute.xlu1 %189 }
  0xff   : > { %v197_v14 = vsub.f32 %v173_v5, %v190_v13 }
 0x100   : > { %v180_v15 = vpop.permute.xlu0 %179 }
 0x101   : > { %v207_v17 = vmul.f32 2.0, %v197_v14  ;;  %v185_v19 = vadd.f32 %v180_v15, %v173_v5  ;;  %v219_v30 = vrot.slane %v197_v14, 2 }
 0x102   : > { %v192_v16 = vpop.permute.xlu1 %191 }
 0x103   : > { %v198_v18 = vsub.f32 %v174_v7, %v192_v16  ;;  %v212_v24 = vrot.slane %v207_v17, 1  ;;  %v195_v26 = vadd.f32 %v190_v13, %v185_v19 }
 0x104   : > { %v251_v20 = vpop.permute.xlu0 %250 }
 0x105   : > { %v208_v21 = vmul.f32 2.0, %v198_v18  ;;  %v258_v22 = vsub.f32 %v234_v8, %v251_v20  ;;  %v220_v27 = vrot.slane %v198_v18, 2  ;;  %v202_v38 = vrot.slane %v195_v26, 2 }
 0x106   : > { %v182_v23 = vpop.permute.xlu1 %181 }
 0x107   : > { %v213_v25 = vrot.slane %v208_v21, 1  ;;  %v186_v28 = vadd.f32 %v182_v23, %v174_v7  ;;  %v267_v33 = vmul.f32 2.0, %v258_v22  ;;  %v221_v39 = vsel %vm201_vm4, %v219_v30, %v220_v27 }
 0x108   : > { %v241_v29 = vpop.permute.xlu0 %240  ;;  %v278_v51 = vrot.slane %v258_v22, 2 }
 0x109   : > { %v214_v31 = vsel %vm211_vm3, %v212_v24, %v213_v25  ;;  %v196_v34 = vadd.f32 %v192_v16, %v186_v28  ;;  %v246_v35 = vadd.f32 %v241_v29, %v234_v8  ;;  %v271_v43 = vrot.slane %v267_v33, 1 }
 0x10a   : > { %v216_v32 = vadd.f32 %v214_v31, %v197_v14  ;;  %v253_v36 = vpop.permute.xlu1 %252 }
 0x10b   : > { %v259_v37 = vsub.f32 %v235_v11, %v253_v36  ;;  %v203_v40 = vrot.slane %v196_v34, 2  ;;  %v256_v45 = vadd.f32 %v251_v20, %v246_v35 }
 0x10c   : > { %v223_v41 = vadd.f32 %v221_v39, %v216_v32 }
 0x10d   : > { %v268_v42 = vmul.f32 2.0, %v259_v37  ;;  %v204_v44 = vsel %vm201_vm4, %v202_v38, %v203_v40  ;;  %v279_v49 = vrot.slane %v259_v37, 2  ;;  %v262_v58 = vrot.slane %v256_v45, 2 }
 0x10e   : > { %v243_v46 = vpop.permute.xlu1 %242  ;;  %v206_v47 = vsub.f32 %v195_v26, %v204_v44  ;;  %v224_v52 = vmul.f32 %v223_v41, %v223_v41 }
 0x10f   : > { %v272_v48 = vrot.slane %v268_v42, 1  ;;  %v247_v50 = vadd.f32 %v243_v46, %v235_v11  ;;  %v280_v59 = vsel %vm201_vm4, %v278_v51, %v279_v49 }
 0x110   : > { %v225_v53 = vmul.f32 %v206_v47, %v206_v47 }
 0x111   : > { %v273_v54 = vsel %vm211_vm3, %v271_v43, %v272_v48  ;;  %v257_v55 = vadd.f32 %v253_v36, %v247_v50 }
 0x112   : > { %v275_v56 = vadd.f32 %v273_v54, %v258_v22  ;;  %v226_v57 = vadd.f32 %v225_v53, %v224_v52 }
 0x113   : > { %v263_v60 = vrot.slane %v257_v55, 2 }
 0x114   : > { %v282_v61 = vadd.f32 %v280_v59, %v275_v56  ;;  %436 = vrsqrt.f32 %v226_v57  ;;  %vm229_vm5 = vcmp.eq.f32.partialorder %v226_v57, inf  ;;  %v232_v5 = vand.u32 2147483648, %v226_v57 }
 0x115   : > { %v264_v62 = vsel %vm201_vm4, %v262_v58, %v263_v60  ;;  %vm231_vm6 = vcmp.eq.f32.partialorder %v226_v57, 0.0 }
 0x116   : > { %v266_v63 = vsub.f32 %v256_v45, %v264_v62  ;;  %v283_v0 = vmul.f32 %v282_v61, %v282_v61 }
 0x118   : > { %v284_v1 = vmul.f32 %v266_v63, %v266_v63 }
 0x11a   : > { %v285_v2 = vadd.f32 %v284_v1, %v283_v0 }
 0x11c   : > { %438 = vrsqrt.f32 %v285_v2  ;;  %vm288_vm8 = vcmp.eq.f32.partialorder %v285_v2, inf  ;;  %v291_v12 = vand.u32 2147483648, %v285_v2  ;;  %vm290_vm9 = vcmp.eq.f32.partialorder %v285_v2, 0.0 }
 0x11e   : > { %v437_v3 = vpop.eup %436 }
 0x11f   : > { %v228_v4 = vmul.f32 %v437_v3, %v226_v57 }
 0x121   : > { %v230_v6 = vsel %vm229_vm5, %v226_v57, %v228_v4 }
 0x122   : > { %v233_v7 = vsel %vm231_vm6, %v232_v5, %v230_v6 }
 0x123   : > { %v293_v8 = vmul.f32 %v233_v7, %v233_v7 }
 0x125   : > { %v295_v10 = vsel %vm294_vm7, %v293_v8, 0.0 }
 0x126   : > { %v439_v9 = vpop.eup %438  ;;  %296 = vadd.xlane.f32.xlu0 %v295_v10 }
 0x127   : > { %v287_v11 = vmul.f32 %v439_v9, %v285_v2 }
 0x129   : > { %v289_v13 = vsel %vm288_vm8, %v285_v2, %v287_v11 }
 0x12a   : > { %v292_v14 = vsel %vm290_vm9, %v291_v12, %v289_v13 }
 0x12b   : > { %v304_v15 = vmul.f32 %v292_v14, %v292_v14 }
 0x12d   : > { %v305_v16 = vsel %vm294_vm7, %v304_v15, 0.0 }
 0x12e   : > { %306 = vadd.xlane.f32.xlu1 %v305_v16 }
 0x1b3   : > { %v297_v17 = vpop.xlane.xlu0 %296 }
 0x1b4   : > { %v298_v18 = vrot.slane %v297_v17, 4 }
 0x1b6   : > { %v299_v19 = vadd.f32 %v298_v18, %v297_v17 }
 0x1b8   : > { %v300_v20 = vrot.slane %v299_v19, 2 }
 0x1ba   : > { %v301_v21 = vadd.f32 %v300_v20, %v299_v19 }
 0x1bb   : > { %v307_v22 = vpop.xlane.xlu1 %306 }
 0x1bc   : > { %v308_v23 = vrot.slane %v307_v22, 4  ;;  %v302_v24 = vrot.slane %v301_v21, 1 }
 0x1be   : > { %v309_v25 = vadd.f32 %v308_v23, %v307_v22  ;;  %v303_v26 = vadd.f32 %v302_v24, %v301_v21 }
 0x1c0   : > { %v310_v27 = vrot.slane %v309_v25, 2  ;;  %440 = vrcp.f32 %v303_v26 }
 0x1c2   : > { %v311_v28 = vadd.f32 %v310_v27, %v309_v25 }
 0x1c4   : > { %v312_v29 = vrot.slane %v311_v28, 1 }
 0x1c6   : > { %v313_v30 = vadd.f32 %v312_v29, %v311_v28 }
 0x1ca   : > { %v441_v31 = vpop.eup %440 }
 0x1cb   : > { %v315_v32 = vmul.f32 %v441_v31, %v313_v30 }
 0x1cd   : > { %442 = vrsqrt.f32 %v315_v32  ;;  %vm318_vm10 = vcmp.eq.f32.partialorder %v315_v32, inf  ;;  %v321_v35 = vand.u32 2147483648, %v315_v32  ;;  %vm320_vm11 = vcmp.eq.f32.partialorder %v315_v32, 0.0 }
 0x1d7   : > { %v443_v33 = vpop.eup %442 }
 0x1d8   : > { %v317_v34 = vmul.f32 %v443_v33, %v315_v32 }
 0x1da   : > { %v319_v36 = vsel %vm318_vm10, %v315_v32, %v317_v34 }
 0x1db   : > { %v322_v37 = vsel %vm320_vm11, %v321_v35, %v319_v36 }
 0x1dc   : > { %444 = vrsqrt.f32 %v322_v37  ;;  %vm325_vm12 = vcmp.eq.f32.partialorder %v322_v37, inf  ;;  %v328_v40 = vand.u32 2147483648, %v322_v37  ;;  %vm327_vm13 = vcmp.eq.f32.partialorder %v322_v37, 0.0 }
 0x1e6   : > { %v445_v38 = vpop.eup %444 }
 0x1e7   : > { %v324_v39 = vmul.f32 %v445_v38, %v322_v37 }
 0x1e9   : > { %v326_v41 = vsel %vm325_vm12, %v322_v37, %v324_v39 }
 0x1ea   : > { %v329_v42 = vsel %vm327_vm13, %v328_v40, %v326_v41 }
 0x1eb   : > { %446 = vrcp.f32 %v329_v42  ;;  %v332_v43 = vmul.f32 %v329_v42, %v233_v7 }
 0x1ed   : > { %448 = vtanh.f32 %v332_v43 }
 0x1f5   : > { %v447_v44 = vpop.eup %446 }
 0x1f6   : > { %v334_v45 = vmul.f32 %v447_v44, %v292_v14 }
 0x1f7   : > { %v449_v46 = vpop.eup %448 }
 0x1f8   : > { %450 = vtanh.f32 %v334_v45 }
 0x202   : > { %v451_v47 = vpop.eup %450 }
 0x203   : > { %v336_v48 = vmul.f32 %v451_v47, %v449_v46 }
 0x205   : > { %v337_v49 = vmul.f32 %v336_v48, %v336_v48 }
 0x207   : > { %v338_v50 = vsel %vm294_vm7, %v337_v49, 0.0 }
 0x208   : > { %339 = vadd.xlane.f32.xlu0 %v338_v50 }
 0x295   : > { %v340_v51 = vpop.xlane.xlu0 %339 }
 0x296   : > { %v341_v52 = vrot.slane %v340_v51, 4 }
 0x298   : > { %v342_v53 = vadd.f32 %v341_v52, %v340_v51 }
 0x29a   : > { %v343_v54 = vrot.slane %v342_v53, 2 }
 0x29c   : > { %v344_v55 = vadd.f32 %v343_v54, %v342_v53 }
 0x29e   : > { %v345_v56 = vrot.slane %v344_v55, 1 }
 0x2a0   : > { %v346_v57 = vadd.f32 %v345_v56, %v344_v55 }
 0x2a2   : > { %452 = vrsqrt.f32 %v346_v57  ;;  %vm349_vm15 = vcmp.eq.f32.partialorder %v346_v57, inf  ;;  %v352_v60 = vand.u32 2147483648, %v346_v57  ;;  %vm351_vm0 = vcmp.eq.f32.partialorder %v346_v57, 0.0 }
 0x2ac   : > { %v453_v58 = vpop.eup %452 }
 0x2ad   : > { %v348_v59 = vmul.f32 %v453_v58, %v346_v57 }
 0x2af   : > { %v350_v61 = vsel %vm349_vm15, %v346_v57, %v348_v59 }
 0x2b0   : > { %v353_v62 = vsel %vm351_vm0, %v352_v60, %v350_v61 }
 0x2b1   : > { %355 = vst.msk [vmem:[%s153_s23] sm:$0x1] %vm354_vm14, %v353_v62 }
 0x2b2 PF: > { %s12_s9 = sadd.s32 1, %s460_s9  }
 0x2b3   : > { %p9_p4 = scmp.ge.s32.totalorder %s12_s9, 4  }
 0x2b5   :  { %11 = sbr.rel (!%p9_p4) target bundleno = 1 (0x1), region = 61 }

</bundles_post_ra>
